<compile_context>
chip_gen: v7x
topology: tpu7x:2x2x1
jax: 0.10.0
libtpu: 0.0.40
codegen_flags: <defaults>
</compile_context>

<pallas_src>
import jax
import jax.numpy as jnp
from jax.experimental import pallas as pl
from jax.experimental.pallas import tpu as pltpu

# ----- small, forward-consistent config -----
B = 2           # batch_size
SEG = 8         # segment_len
STATE = 8       # state_len
D = 32          # dim_input
DH = 64         # dim_hidden (MLP hidden, mlp_multiplier = 1)
H = 4           # num_heads
DK = 16         # dims_key per head
DV = 16         # dims_value per head
NUM_LAYERS = 2
T = STATE + SEG + STATE      # 24: keys  per batch = [read-state | segment | write-state]
QLEN = SEG + STATE           # 16: query rows actually consumed = [segment | write-state]
HDK = H * DK                 # 64
HDV = H * DV                 # 64
EPS = 1e-5


def _layernorm(x, gamma, beta):
    mu = jnp.mean(x, axis=-1, keepdims=True)
    var = jnp.mean((x - mu) ** 2, axis=-1, keepdims=True)
    return (x - mu) * jax.lax.rsqrt(var + EPS) * gamma + beta


def arcformer_kernel(x_ref, st_ref, wqkv_ref, wo_ref, w1_ref, w2_ref, vec_ref,
                     out_ref, state_out_ref):
    # x_ref : (B*SEG,   D) segment rows, batch-major
    # st_ref: (B*STATE, D) state rows,  batch-major
    x2 = x_ref[...]
    st2 = st_ref[...]

    # ---- ARC attention (simplified stateful causal MHA) ----
    # TODO(synk): ARC internals (attn_normalize, CoPE, RoPE `offset`, Hopfield betas,
    # diff_attn, low-rank attn projection) are not reproducible without the ARC source;
    # approximated as vanilla stateful causal MHA.

    # Fused Q/K/V projection for all state+segment rows of both batches: one matmul.
    u = jnp.concatenate([st2, x2], axis=0)                      # (B*(STATE+SEG), D) = (32, 32)
    proj = jnp.dot(u.astype(jnp.bfloat16), wqkv_ref[...],
                   preferred_element_type=jnp.float32)          # (32, H*(2*DK+DV)) = (32, 192)
    q_all = proj[:, :HDK]
    k_all = proj[:, HDK:2 * HDK]
    v_all = proj[:, 2 * HDK:]

    # Mask for (QLEN, T) scores: query i sits at global row STATE+i of
    # [read-state | segment | write-state]; leading read-state always visible, else causal.
    row = jax.lax.broadcasted_iota(jnp.int32, (QLEN, T), 0)
    col = jax.lax.broadcasted_iota(jnp.int32, (QLEN, T), 1)
    mask = jnp.logical_or(col < STATE, col <= row + STATE)

    scale = 1.0 / (DK ** 0.5)

    o_heads = []                                   # per-batch concat-over-heads outputs
    for b in range(B):                             # static unroll over batch
        st_rows = slice(b * STATE, (b + 1) * STATE)
        x_rows = slice(B * STATE + b * SEG, B * STATE + (b + 1) * SEG)
        # queries: [segment | write-state]; keys/values: [read-state | segment | write-state]
        q_b = jnp.concatenate([q_all[x_rows], q_all[st_rows]], axis=0)                   # (QLEN, HDK)
        k_b = jnp.concatenate([k_all[st_rows], k_all[x_rows], k_all[st_rows]], axis=0)   # (T, HDK)
        v_b = jnp.concatenate([v_all[st_rows], v_all[x_rows], v_all[st_rows]], axis=0)   # (T, HDV)

        heads = []
        for h in range(H):                         # static unroll over heads
            qh = q_b[:, h * DK:(h + 1) * DK]
            kh = k_b[:, h * DK:(h + 1) * DK]
            vh = v_b[:, h * DV:(h + 1) * DV]
            s = jax.lax.dot_general(qh, kh, (((1,), (1,)), ((), ())),
                                    preferred_element_type=jnp.float32) * scale          # (QLEN, T)
            s = jnp.where(mask, s, -1e30)
            s = s - jnp.max(s, axis=-1, keepdims=True)
            p = jnp.exp(s)
            p = p * pl.reciprocal(jnp.sum(p, axis=-1, keepdims=True), approx=True)
            heads.append(jnp.dot(p, vh, preferred_element_type=jnp.float32))             # (QLEN, DV)
        o_heads.append(jnp.concatenate(heads, axis=-1))                                  # (QLEN, HDV)

    # Single output projection across both batches and all heads.
    o_cat = jnp.concatenate(o_heads, axis=0)                                             # (B*QLEN, HDV)
    att = jnp.dot(o_cat.astype(jnp.bfloat16), wo_ref[...],
                  preferred_element_type=jnp.float32)                                    # (B*QLEN, D)

    # Split into segment output and next-state rows (batch-major).
    x_att = jnp.concatenate([att[b * QLEN:b * QLEN + SEG] for b in range(B)], axis=0)        # (B*SEG, D)
    next_state = jnp.concatenate([att[b * QLEN + SEG:(b + 1) * QLEN] for b in range(B)], axis=0)  # (B*STATE, D)

    # Packed per-feature vectors.
    vecs = vec_ref[...]
    ang, anb = vecs[0:1, :D], vecs[1:2, :D]
    b1 = vecs[2:3, :DH]
    b2 = vecs[3:4, :D]
    mng, mnb = vecs[4:5, :D], vecs[5:6, :D]

    # ---- x_ = attn_norm(dropout1(x_) + x)  (dropout 0.0 -> identity) ----
    h1 = _layernorm(x_att + x2, ang, anb)

    # ---- x_ = dropout2(mlp(x_)) : Linear / ReLU / Linear ----
    m = jnp.dot(h1.astype(jnp.bfloat16), w1_ref[...],
                preferred_element_type=jnp.float32) + b1
    m = jnp.maximum(m, 0.0)
    m = jnp.dot(m.astype(jnp.bfloat16), w2_ref[...],
                preferred_element_type=jnp.float32) + b2

    # ---- x_ = mlp_norm(x_ + x)  (mlp_multiplier == 1 branch) ----
    out = _layernorm(m + x2, mng, mnb)

    out_ref[...] = out.astype(out_ref.dtype)
    state_out_ref[...] = next_state.astype(state_out_ref.dtype)


def init_params(key):
    ks = jax.random.split(key, 6)
    std = 0.02
    return {
        "wq": jax.random.normal(ks[0], (D, HDK), jnp.float32) * std,
        "wk": jax.random.normal(ks[1], (D, HDK), jnp.float32) * std,
        "wv": jax.random.normal(ks[2], (D, HDV), jnp.float32) * std,
        "wo": jax.random.normal(ks[3], (HDV, D), jnp.float32) * std,
        "ang": jnp.ones((D,), jnp.float32),
        "anb": jnp.zeros((D,), jnp.float32),
        "w1": jax.random.normal(ks[4], (D, DH), jnp.float32) * std,
        "b1": jnp.zeros((DH,), jnp.float32),
        # matches torch.nn.init.normal_(std=(1/(2*num_layers))**0.5) on the last MLP layer
        "w2": jax.random.normal(ks[5], (DH, D), jnp.float32)
              * ((1.0 / (2 * NUM_LAYERS)) ** 0.5),
        "b2": jnp.zeros((D,), jnp.float32),
        "mng": jnp.ones((D,), jnp.float32),
        "mnb": jnp.zeros((D,), jnp.float32),
    }


def _pack_params(params):
    # Fused QKV weight (bf16 for the MXU; f32 accumulation in-kernel).
    wqkv = jnp.concatenate([params["wq"], params["wk"], params["wv"]],
                           axis=1).astype(jnp.bfloat16)          # (D, H*(2*DK+DV))
    wo = params["wo"].astype(jnp.bfloat16)
    w1 = params["w1"].astype(jnp.bfloat16)
    w2 = params["w2"].astype(jnp.bfloat16)

    def pad(v):
        return jnp.pad(v, (0, DH - v.shape[0]))

    # One (8, DH) f32 operand holding all tiny vectors (LN params + MLP biases).
    vecs = jnp.stack([pad(params["ang"]), pad(params["anb"]), params["b1"],
                      pad(params["b2"]), pad(params["mng"]), pad(params["mnb"]),
                      jnp.zeros((DH,), jnp.float32), jnp.zeros((DH,), jnp.float32)],
                     axis=0)
    return wqkv, wo, w1, w2, vecs


def _full_spec(a):
    return pl.BlockSpec(a.shape, lambda i, nd=a.ndim: (0,) * nd)


def arcformer_forward(x, state, params, offset: int = 0):
    """Returns (out (B, SEG, D), next_state (B, STATE, D))."""
    # TODO(synk): `offset` would feed RoPE; position_embedders=[None] here, so unused.
    del offset
    wqkv, wo, w1, w2, vecs = _pack_params(params)
    x2 = x.reshape(B * SEG, D)
    st2 = state.reshape(B * STATE, D)

    operands = (x2, st2, wqkv, wo, w1, w2, vecs)
    in_specs = [_full_spec(a) for a in operands]
    out_specs = (pl.BlockSpec((B * SEG, D), lambda i: (0, 0)),
                 pl.BlockSpec((B * STATE, D), lambda i: (0, 0)))
    out_shape = (jax.ShapeDtypeStruct((B * SEG, D), jnp.float32),
                 jax.ShapeDtypeStruct((B * STATE, D), jnp.float32))

    # Rough advisory cost hint for XLA's scheduler.
    flops = (2 * (B * (STATE + SEG)) * D * (H * (2 * DK + DV))   # fused QKV proj
             + 2 * B * H * QLEN * T * DK                          # scores
             + 2 * B * H * QLEN * T * DV                          # P @ V
             + 2 * (B * QLEN) * HDV * D                           # Wo
             + 2 * (B * SEG) * D * DH                             # MLP 1
             + 2 * (B * SEG) * DH * D)                            # MLP 2
    transcendentals = B * H * QLEN * T + B * H * QLEN + 2 * B * SEG
    bytes_accessed = sum(int(a.size) * a.dtype.itemsize for a in operands) \
        + (B * SEG * D + B * STATE * D) * 4
    cost = pl.CostEstimate(flops=flops, transcendentals=transcendentals,
                           bytes_accessed=bytes_accessed)

    out2, st_out2 = pl.pallas_call(
        arcformer_kernel,
        grid=(1,),
        in_specs=in_specs,
        out_specs=out_specs,
        out_shape=out_shape,
        compiler_params=pltpu.CompilerParams(
            dimension_semantics=("arbitrary",)),
        cost_estimate=cost,
    )(*operands)

    return out2.reshape(B, SEG, D), st_out2.reshape(B, STATE, D)


if __name__ == "__main__":
    key = jax.random.PRNGKey(0)
    kx, ks, kp = jax.random.split(key, 3)
    x = jax.random.normal(kx, (B, SEG, D), jnp.float32)
    state = jax.random.normal(ks, (B, STATE, D), jnp.float32)
    params = init_params(kp)

    out, next_state = arcformer_forward(x, state, params, offset=0)
    jax.block_until_ready((out, next_state))

    assert out.shape == (B, SEG, D)
    assert next_state.shape == (B, STATE, D)
    assert jnp.all(jnp.isfinite(out)) and jnp.all(jnp.isfinite(next_state))
    print("KERNEL_OK")
</pallas_src>

<mosaic_0001>
module attributes {stable_mosaic.version = 11 : i64} {
  func.func @arcformer_kernel(%arg0: i32, %arg1: memref<16x32xf32, #tpu.memory_space<vmem>>, %arg2: memref<16x32xf32, #tpu.memory_space<vmem>>, %arg3: memref<32x192xbf16, #tpu.memory_space<vmem>>, %arg4: memref<64x32xbf16, #tpu.memory_space<vmem>>, %arg5: memref<32x64xbf16, #tpu.memory_space<vmem>>, %arg6: memref<64x32xbf16, #tpu.memory_space<vmem>>, %arg7: memref<8x64xf32, #tpu.memory_space<vmem>>, %arg8: memref<16x32xf32, #tpu.memory_space<vmem>>, %arg9: memref<16x32xf32, #tpu.memory_space<vmem>>) attributes {dimension_semantics = [#tpu.dimension_semantics<arbitrary>], iteration_bounds = array<i64: 1>, scalar_prefetch = 0 : i64, scratch_operands = 0 : i64, tpu.core_type = #tpu.core_type<tc>, window_params = [{pipeline_mode = #tpu.pipeline_mode<synchronous>, transform_indices = @transform_0, window_bounds = array<i64: 16, 32>}, {pipeline_mode = #tpu.pipeline_mode<synchronous>, transform_indices = @transform_1, window_bounds = array<i64: 16, 32>}, {pipeline_mode = #tpu.pipeline_mode<synchronous>, transform_indices = @transform_2, window_bounds = array<i64: 32, 192>}, {pipeline_mode = #tpu.pipeline_mode<synchronous>, transform_indices = @transform_3, window_bounds = array<i64: 64, 32>}, {pipeline_mode = #tpu.pipeline_mode<synchronous>, transform_indices = @transform_4, window_bounds = array<i64: 32, 64>}, {pipeline_mode = #tpu.pipeline_mode<synchronous>, transform_indices = @transform_5, window_bounds = array<i64: 64, 32>}, {pipeline_mode = #tpu.pipeline_mode<synchronous>, transform_indices = @transform_6, window_bounds = array<i64: 8, 64>}, {pipeline_mode = #tpu.pipeline_mode<synchronous>, transform_indices = @transform_7, window_bounds = array<i64: 16, 32>}, {pipeline_mode = #tpu.pipeline_mode<synchronous>, transform_indices = @transform_8, window_bounds = array<i64: 16, 32>}]} {
    %c0 = arith.constant 0 : index
    %c0_0 = arith.constant 0 : index
    %0 = vector.load %arg1[%c0, %c0_0] : memref<16x32xf32, #tpu.memory_space<vmem>>, vector<16x32xf32>
    %c0_1 = arith.constant 0 : index
    %c0_2 = arith.constant 0 : index
    %1 = vector.load %arg2[%c0_1, %c0_2] : memref<16x32xf32, #tpu.memory_space<vmem>>, vector<16x32xf32>
    %2 = tpu.concatenate %1, %0 in 0 : vector<16x32xf32>, vector<16x32xf32> -> vector<32x32xf32>
    %3 = arith.truncf %2 : vector<32x32xf32> to vector<32x32xbf16>
    %c0_3 = arith.constant 0 : index
    %c0_4 = arith.constant 0 : index
    %4 = vector.load %arg3[%c0_3, %c0_4] : memref<32x192xbf16, #tpu.memory_space<vmem>>, vector<32x192xbf16>
    %cst = arith.constant dense<0.000000e+00> : vector<32x192xf32>
    %5 = tpu.matmul %3, %4, %cst {dimension_numbers = #tpu.dot_dimension_numbers<[1], [0], [0], [1], [0, 0, 1, 1], [], []>} : vector<32x32xbf16>, vector<32x192xbf16>, vector<32x192xf32> -> vector<32x192xf32>
    %6 = vector.extract_strided_slice %5 {offsets = [0, 0], sizes = [32, 64], strides = [1, 1]} : vector<32x192xf32> to vector<32x64xf32>
    %7 = vector.extract_strided_slice %5 {offsets = [0, 64], sizes = [32, 64], strides = [1, 1]} : vector<32x192xf32> to vector<32x64xf32>
    %8 = vector.extract_strided_slice %5 {offsets = [0, 128], sizes = [32, 64], strides = [1, 1]} : vector<32x192xf32> to vector<32x64xf32>
    %9 = tpu.iota {dimensions = array<i32: 0>} : vector<16x24xi32>
    %10 = tpu.iota {dimensions = array<i32: 1>} : vector<16x24xi32>
    %c8_i32 = arith.constant 8 : i32
    %11 = vector.broadcast %c8_i32 : i32 to vector<16x24xi32>
    %12 = arith.cmpi slt, %10, %11 : vector<16x24xi32>
    %c8_i32_5 = arith.constant 8 : i32
    %13 = vector.broadcast %c8_i32_5 : i32 to vector<16x24xi32>
    %14 = arith.addi %9, %13 : vector<16x24xi32>
    %15 = arith.cmpi sle, %10, %14 : vector<16x24xi32>
    %16 = arith.ori %12, %15 : vector<16x24xi1>
    %17 = vector.extract_strided_slice %6 {offsets = [16, 0], sizes = [8, 64], strides = [1, 1]} : vector<32x64xf32> to vector<8x64xf32>
    %18 = vector.extract_strided_slice %6 {offsets = [0, 0], sizes = [8, 64], strides = [1, 1]} : vector<32x64xf32> to vector<8x64xf32>
    %19 = tpu.concatenate %17, %18 in 0 : vector<8x64xf32>, vector<8x64xf32> -> vector<16x64xf32>
    %20 = vector.extract_strided_slice %7 {offsets = [0, 0], sizes = [8, 64], strides = [1, 1]} : vector<32x64xf32> to vector<8x64xf32>
    %21 = vector.extract_strided_slice %7 {offsets = [16, 0], sizes = [8, 64], strides = [1, 1]} : vector<32x64xf32> to vector<8x64xf32>
    %22 = vector.extract_strided_slice %7 {offsets = [0, 0], sizes = [8, 64], strides = [1, 1]} : vector<32x64xf32> to vector<8x64xf32>
    %23 = tpu.concatenate %20, %21, %22 in 0 : vector<8x64xf32>, vector<8x64xf32>, vector<8x64xf32> -> vector<24x64xf32>
    %24 = vector.extract_strided_slice %8 {offsets = [0, 0], sizes = [8, 64], strides = [1, 1]} : vector<32x64xf32> to vector<8x64xf32>
    %25 = vector.extract_strided_slice %8 {offsets = [16, 0], sizes = [8, 64], strides = [1, 1]} : vector<32x64xf32> to vector<8x64xf32>
    %26 = vector.extract_strided_slice %8 {offsets = [0, 0], sizes = [8, 64], strides = [1, 1]} : vector<32x64xf32> to vector<8x64xf32>
    %27 = tpu.concatenate %24, %25, %26 in 0 : vector<8x64xf32>, vector<8x64xf32>, vector<8x64xf32> -> vector<24x64xf32>
    %28 = vector.extract_strided_slice %19 {offsets = [0, 0], sizes = [16, 16], strides = [1, 1]} : vector<16x64xf32> to vector<16x16xf32>
    %29 = vector.extract_strided_slice %23 {offsets = [0, 0], sizes = [24, 16], strides = [1, 1]} : vector<24x64xf32> to vector<24x16xf32>
    %30 = vector.extract_strided_slice %27 {offsets = [0, 0], sizes = [24, 16], strides = [1, 1]} : vector<24x64xf32> to vector<24x16xf32>
    %cst_6 = arith.constant dense<0.000000e+00> : vector<16x24xf32>
    %31 = tpu.matmul %28, %29, %cst_6 {dimension_numbers = #tpu.dot_dimension_numbers<[1], [1], [0], [0], [0, 0, 1, 0], [], []>} : vector<16x16xf32>, vector<24x16xf32>, vector<16x24xf32> -> vector<16x24xf32>
    %cst_7 = arith.constant 2.500000e-01 : f32
    %32 = vector.broadcast %cst_7 : f32 to vector<16x24xf32>
    %33 = arith.mulf %31, %32 : vector<16x24xf32>
    %cst_8 = arith.constant -1.000000e+30 : f32
    %34 = vector.broadcast %cst_8 : f32 to vector<16x24xf32>
    %35 = arith.select %16, %33, %34 : vector<16x24xi1>, vector<16x24xf32>
    %cst_9 = arith.constant dense<0xFF800000> : vector<16xf32>
    %36 = vector.multi_reduction <maximumf>, %35, %cst_9 [1] : vector<16x24xf32> to vector<16xf32>
    %37 = vector.shape_cast %36 : vector<16xf32> to vector<16x1xf32>
    %38 = vector.broadcast %37 : vector<16x1xf32> to vector<16x24xf32>
    %39 = arith.subf %35, %38 : vector<16x24xf32>
    %40 = math.exp %39 : vector<16x24xf32>
    %cst_10 = arith.constant dense<0.000000e+00> : vector<16xf32>
    %41 = vector.multi_reduction <add>, %40, %cst_10 [1] : vector<16x24xf32> to vector<16xf32>
    %42 = vector.shape_cast %41 : vector<16xf32> to vector<16x1xf32>
    %43 = tpu.reciprocal %42 {approx = true} : vector<16x1xf32> -> vector<16x1xf32>
    %44 = vector.broadcast %43 : vector<16x1xf32> to vector<16x24xf32>
    %45 = arith.mulf %40, %44 : vector<16x24xf32>
    %cst_11 = arith.constant dense<0.000000e+00> : vector<16x16xf32>
    %46 = tpu.matmul %45, %30, %cst_11 {dimension_numbers = #tpu.dot_dimension_numbers<[1], [0], [0], [1], [0, 0, 1, 1], [], []>} : vector<16x24xf32>, vector<24x16xf32>, vector<16x16xf32> -> vector<16x16xf32>
    %47 = vector.extract_strided_slice %19 {offsets = [0, 16], sizes = [16, 16], strides = [1, 1]} : vector<16x64xf32> to vector<16x16xf32>
    %48 = vector.extract_strided_slice %23 {offsets = [0, 16], sizes = [24, 16], strides = [1, 1]} : vector<24x64xf32> to vector<24x16xf32>
    %49 = vector.extract_strided_slice %27 {offsets = [0, 16], sizes = [24, 16], strides = [1, 1]} : vector<24x64xf32> to vector<24x16xf32>
    %cst_12 = arith.constant dense<0.000000e+00> : vector<16x24xf32>
    %50 = tpu.matmul %47, %48, %cst_12 {dimension_numbers = #tpu.dot_dimension_numbers<[1], [1], [0], [0], [0, 0, 1, 0], [], []>} : vector<16x16xf32>, vector<24x16xf32>, vector<16x24xf32> -> vector<16x24xf32>
    %cst_13 = arith.constant 2.500000e-01 : f32
    %51 = vector.broadcast %cst_13 : f32 to vector<16x24xf32>
    %52 = arith.mulf %50, %51 : vector<16x24xf32>
    %cst_14 = arith.constant -1.000000e+30 : f32
    %53 = vector.broadcast %cst_14 : f32 to vector<16x24xf32>
    %54 = arith.select %16, %52, %53 : vector<16x24xi1>, vector<16x24xf32>
    %cst_15 = arith.constant dense<0xFF800000> : vector<16xf32>
    %55 = vector.multi_reduction <maximumf>, %54, %cst_15 [1] : vector<16x24xf32> to vector<16xf32>
    %56 = vector.shape_cast %55 : vector<16xf32> to vector<16x1xf32>
    %57 = vector.broadcast %56 : vector<16x1xf32> to vector<16x24xf32>
    %58 = arith.subf %54, %57 : vector<16x24xf32>
    %59 = math.exp %58 : vector<16x24xf32>
    %cst_16 = arith.constant dense<0.000000e+00> : vector<16xf32>
    %60 = vector.multi_reduction <add>, %59, %cst_16 [1] : vector<16x24xf32> to vector<16xf32>
    %61 = vector.shape_cast %60 : vector<16xf32> to vector<16x1xf32>
    %62 = tpu.reciprocal %61 {approx = true} : vector<16x1xf32> -> vector<16x1xf32>
    %63 = vector.broadcast %62 : vector<16x1xf32> to vector<16x24xf32>
    %64 = arith.mulf %59, %63 : vector<16x24xf32>
    %cst_17 = arith.constant dense<0.000000e+00> : vector<16x16xf32>
    %65 = tpu.matmul %64, %49, %cst_17 {dimension_numbers = #tpu.dot_dimension_numbers<[1], [0], [0], [1], [0, 0, 1, 1], [], []>} : vector<16x24xf32>, vector<24x16xf32>, vector<16x16xf32> -> vector<16x16xf32>
    %66 = vector.extract_strided_slice %19 {offsets = [0, 32], sizes = [16, 16], strides = [1, 1]} : vector<16x64xf32> to vector<16x16xf32>
    %67 = vector.extract_strided_slice %23 {offsets = [0, 32], sizes = [24, 16], strides = [1, 1]} : vector<24x64xf32> to vector<24x16xf32>
    %68 = vector.extract_strided_slice %27 {offsets = [0, 32], sizes = [24, 16], strides = [1, 1]} : vector<24x64xf32> to vector<24x16xf32>
    %cst_18 = arith.constant dense<0.000000e+00> : vector<16x24xf32>
    %69 = tpu.matmul %66, %67, %cst_18 {dimension_numbers = #tpu.dot_dimension_numbers<[1], [1], [0], [0], [0, 0, 1, 0], [], []>} : vector<16x16xf32>, vector<24x16xf32>, vector<16x24xf32> -> vector<16x24xf32>
    %cst_19 = arith.constant 2.500000e-01 : f32
    %70 = vector.broadcast %cst_19 : f32 to vector<16x24xf32>
    %71 = arith.mulf %69, %70 : vector<16x24xf32>
    %cst_20 = arith.constant -1.000000e+30 : f32
    %72 = vector.broadcast %cst_20 : f32 to vector<16x24xf32>
    %73 = arith.select %16, %71, %72 : vector<16x24xi1>, vector<16x24xf32>
    %cst_21 = arith.constant dense<0xFF800000> : vector<16xf32>
    %74 = vector.multi_reduction <maximumf>, %73, %cst_21 [1] : vector<16x24xf32> to vector<16xf32>
    %75 = vector.shape_cast %74 : vector<16xf32> to vector<16x1xf32>
    %76 = vector.broadcast %75 : vector<16x1xf32> to vector<16x24xf32>
    %77 = arith.subf %73, %76 : vector<16x24xf32>
    %78 = math.exp %77 : vector<16x24xf32>
    %cst_22 = arith.constant dense<0.000000e+00> : vector<16xf32>
    %79 = vector.multi_reduction <add>, %78, %cst_22 [1] : vector<16x24xf32> to vector<16xf32>
    %80 = vector.shape_cast %79 : vector<16xf32> to vector<16x1xf32>
    %81 = tpu.reciprocal %80 {approx = true} : vector<16x1xf32> -> vector<16x1xf32>
    %82 = vector.broadcast %81 : vector<16x1xf32> to vector<16x24xf32>
    %83 = arith.mulf %78, %82 : vector<16x24xf32>
    %cst_23 = arith.constant dense<0.000000e+00> : vector<16x16xf32>
    %84 = tpu.matmul %83, %68, %cst_23 {dimension_numbers = #tpu.dot_dimension_numbers<[1], [0], [0], [1], [0, 0, 1, 1], [], []>} : vector<16x24xf32>, vector<24x16xf32>, vector<16x16xf32> -> vector<16x16xf32>
    %85 = vector.extract_strided_slice %19 {offsets = [0, 48], sizes = [16, 16], strides = [1, 1]} : vector<16x64xf32> to vector<16x16xf32>
    %86 = vector.extract_strided_slice %23 {offsets = [0, 48], sizes = [24, 16], strides = [1, 1]} : vector<24x64xf32> to vector<24x16xf32>
    %87 = vector.extract_strided_slice %27 {offsets = [0, 48], sizes = [24, 16], strides = [1, 1]} : vector<24x64xf32> to vector<24x16xf32>
    %cst_24 = arith.constant dense<0.000000e+00> : vector<16x24xf32>
    %88 = tpu.matmul %85, %86, %cst_24 {dimension_numbers = #tpu.dot_dimension_numbers<[1], [1], [0], [0], [0, 0, 1, 0], [], []>} : vector<16x16xf32>, vector<24x16xf32>, vector<16x24xf32> -> vector<16x24xf32>
    %cst_25 = arith.constant 2.500000e-01 : f32
    %89 = vector.broadcast %cst_25 : f32 to vector<16x24xf32>
    %90 = arith.mulf %88, %89 : vector<16x24xf32>
    %cst_26 = arith.constant -1.000000e+30 : f32
    %91 = vector.broadcast %cst_26 : f32 to vector<16x24xf32>
    %92 = arith.select %16, %90, %91 : vector<16x24xi1>, vector<16x24xf32>
    %cst_27 = arith.constant dense<0xFF800000> : vector<16xf32>
    %93 = vector.multi_reduction <maximumf>, %92, %cst_27 [1] : vector<16x24xf32> to vector<16xf32>
    %94 = vector.shape_cast %93 : vector<16xf32> to vector<16x1xf32>
    %95 = vector.broadcast %94 : vector<16x1xf32> to vector<16x24xf32>
    %96 = arith.subf %92, %95 : vector<16x24xf32>
    %97 = math.exp %96 : vector<16x24xf32>
    %cst_28 = arith.constant dense<0.000000e+00> : vector<16xf32>
    %98 = vector.multi_reduction <add>, %97, %cst_28 [1] : vector<16x24xf32> to vector<16xf32>
    %99 = vector.shape_cast %98 : vector<16xf32> to vector<16x1xf32>
    %100 = tpu.reciprocal %99 {approx = true} : vector<16x1xf32> -> vector<16x1xf32>
    %101 = vector.broadcast %100 : vector<16x1xf32> to vector<16x24xf32>
    %102 = arith.mulf %97, %101 : vector<16x24xf32>
    %cst_29 = arith.constant dense<0.000000e+00> : vector<16x16xf32>
    %103 = tpu.matmul %102, %87, %cst_29 {dimension_numbers = #tpu.dot_dimension_numbers<[1], [0], [0], [1], [0, 0, 1, 1], [], []>} : vector<16x24xf32>, vector<24x16xf32>, vector<16x16xf32> -> vector<16x16xf32>
    %104 = tpu.concatenate %46, %65, %84, %103 in 1 : vector<16x16xf32>, vector<16x16xf32>, vector<16x16xf32>, vector<16x16xf32> -> vector<16x64xf32>
    %105 = vector.extract_strided_slice %6 {offsets = [24, 0], sizes = [8, 64], strides = [1, 1]} : vector<32x64xf32> to vector<8x64xf32>
    %106 = vector.extract_strided_slice %6 {offsets = [8, 0], sizes = [8, 64], strides = [1, 1]} : vector<32x64xf32> to vector<8x64xf32>
    %107 = tpu.concatenate %105, %106 in 0 : vector<8x64xf32>, vector<8x64xf32> -> vector<16x64xf32>
    %108 = vector.extract_strided_slice %7 {offsets = [8, 0], sizes = [8, 64], strides = [1, 1]} : vector<32x64xf32> to vector<8x64xf32>
    %109 = vector.extract_strided_slice %7 {offsets = [24, 0], sizes = [8, 64], strides = [1, 1]} : vector<32x64xf32> to vector<8x64xf32>
    %110 = vector.extract_strided_slice %7 {offsets = [8, 0], sizes = [8, 64], strides = [1, 1]} : vector<32x64xf32> to vector<8x64xf32>
    %111 = tpu.concatenate %108, %109, %110 in 0 : vector<8x64xf32>, vector<8x64xf32>, vector<8x64xf32> -> vector<24x64xf32>
    %112 = vector.extract_strided_slice %8 {offsets = [8, 0], sizes = [8, 64], strides = [1, 1]} : vector<32x64xf32> to vector<8x64xf32>
    %113 = vector.extract_strided_slice %8 {offsets = [24, 0], sizes = [8, 64], strides = [1, 1]} : vector<32x64xf32> to vector<8x64xf32>
    %114 = vector.extract_strided_slice %8 {offsets = [8, 0], sizes = [8, 64], strides = [1, 1]} : vector<32x64xf32> to vector<8x64xf32>
    %115 = tpu.concatenate %112, %113, %114 in 0 : vector<8x64xf32>, vector<8x64xf32>, vector<8x64xf32> -> vector<24x64xf32>
    %116 = vector.extract_strided_slice %107 {offsets = [0, 0], sizes = [16, 16], strides = [1, 1]} : vector<16x64xf32> to vector<16x16xf32>
    %117 = vector.extract_strided_slice %111 {offsets = [0, 0], sizes = [24, 16], strides = [1, 1]} : vector<24x64xf32> to vector<24x16xf32>
    %118 = vector.extract_strided_slice %115 {offsets = [0, 0], sizes = [24, 16], strides = [1, 1]} : vector<24x64xf32> to vector<24x16xf32>
    %cst_30 = arith.constant dense<0.000000e+00> : vector<16x24xf32>
    %119 = tpu.matmul %116, %117, %cst_30 {dimension_numbers = #tpu.dot_dimension_numbers<[1], [1], [0], [0], [0, 0, 1, 0], [], []>} : vector<16x16xf32>, vector<24x16xf32>, vector<16x24xf32> -> vector<16x24xf32>
    %cst_31 = arith.constant 2.500000e-01 : f32
    %120 = vector.broadcast %cst_31 : f32 to vector<16x24xf32>
    %121 = arith.mulf %119, %120 : vector<16x24xf32>
    %cst_32 = arith.constant -1.000000e+30 : f32
    %122 = vector.broadcast %cst_32 : f32 to vector<16x24xf32>
    %123 = arith.select %16, %121, %122 : vector<16x24xi1>, vector<16x24xf32>
    %cst_33 = arith.constant dense<0xFF800000> : vector<16xf32>
    %124 = vector.multi_reduction <maximumf>, %123, %cst_33 [1] : vector<16x24xf32> to vector<16xf32>
    %125 = vector.shape_cast %124 : vector<16xf32> to vector<16x1xf32>
    %126 = vector.broadcast %125 : vector<16x1xf32> to vector<16x24xf32>
    %127 = arith.subf %123, %126 : vector<16x24xf32>
    %128 = math.exp %127 : vector<16x24xf32>
    %cst_34 = arith.constant dense<0.000000e+00> : vector<16xf32>
    %129 = vector.multi_reduction <add>, %128, %cst_34 [1] : vector<16x24xf32> to vector<16xf32>
    %130 = vector.shape_cast %129 : vector<16xf32> to vector<16x1xf32>
    %131 = tpu.reciprocal %130 {approx = true} : vector<16x1xf32> -> vector<16x1xf32>
    %132 = vector.broadcast %131 : vector<16x1xf32> to vector<16x24xf32>
    %133 = arith.mulf %128, %132 : vector<16x24xf32>
    %cst_35 = arith.constant dense<0.000000e+00> : vector<16x16xf32>
    %134 = tpu.matmul %133, %118, %cst_35 {dimension_numbers = #tpu.dot_dimension_numbers<[1], [0], [0], [1], [0, 0, 1, 1], [], []>} : vector<16x24xf32>, vector<24x16xf32>, vector<16x16xf32> -> vector<16x16xf32>
    %135 = vector.extract_strided_slice %107 {offsets = [0, 16], sizes = [16, 16], strides = [1, 1]} : vector<16x64xf32> to vector<16x16xf32>
    %136 = vector.extract_strided_slice %111 {offsets = [0, 16], sizes = [24, 16], strides = [1, 1]} : vector<24x64xf32> to vector<24x16xf32>
    %137 = vector.extract_strided_slice %115 {offsets = [0, 16], sizes = [24, 16], strides = [1, 1]} : vector<24x64xf32> to vector<24x16xf32>
    %cst_36 = arith.constant dense<0.000000e+00> : vector<16x24xf32>
    %138 = tpu.matmul %135, %136, %cst_36 {dimension_numbers = #tpu.dot_dimension_numbers<[1], [1], [0], [0], [0, 0, 1, 0], [], []>} : vector<16x16xf32>, vector<24x16xf32>, vector<16x24xf32> -> vector<16x24xf32>
    %cst_37 = arith.constant 2.500000e-01 : f32
    %139 = vector.broadcast %cst_37 : f32 to vector<16x24xf32>
    %140 = arith.mulf %138, %139 : vector<16x24xf32>
    %cst_38 = arith.constant -1.000000e+30 : f32
    %141 = vector.broadcast %cst_38 : f32 to vector<16x24xf32>
    %142 = arith.select %16, %140, %141 : vector<16x24xi1>, vector<16x24xf32>
    %cst_39 = arith.constant dense<0xFF800000> : vector<16xf32>
    %143 = vector.multi_reduction <maximumf>, %142, %cst_39 [1] : vector<16x24xf32> to vector<16xf32>
    %144 = vector.shape_cast %143 : vector<16xf32> to vector<16x1xf32>
    %145 = vector.broadcast %144 : vector<16x1xf32> to vector<16x24xf32>
    %146 = arith.subf %142, %145 : vector<16x24xf32>
    %147 = math.exp %146 : vector<16x24xf32>
    %cst_40 = arith.constant dense<0.000000e+00> : vector<16xf32>
    %148 = vector.multi_reduction <add>, %147, %cst_40 [1] : vector<16x24xf32> to vector<16xf32>
    %149 = vector.shape_cast %148 : vector<16xf32> to vector<16x1xf32>
    %150 = tpu.reciprocal %149 {approx = true} : vector<16x1xf32> -> vector<16x1xf32>
    %151 = vector.broadcast %150 : vector<16x1xf32> to vector<16x24xf32>
    %152 = arith.mulf %147, %151 : vector<16x24xf32>
    %cst_41 = arith.constant dense<0.000000e+00> : vector<16x16xf32>
    %153 = tpu.matmul %152, %137, %cst_41 {dimension_numbers = #tpu.dot_dimension_numbers<[1], [0], [0], [1], [0, 0, 1, 1], [], []>} : vector<16x24xf32>, vector<24x16xf32>, vector<16x16xf32> -> vector<16x16xf32>
    %154 = vector.extract_strided_slice %107 {offsets = [0, 32], sizes = [16, 16], strides = [1, 1]} : vector<16x64xf32> to vector<16x16xf32>
    %155 = vector.extract_strided_slice %111 {offsets = [0, 32], sizes = [24, 16], strides = [1, 1]} : vector<24x64xf32> to vector<24x16xf32>
    %156 = vector.extract_strided_slice %115 {offsets = [0, 32], sizes = [24, 16], strides = [1, 1]} : vector<24x64xf32> to vector<24x16xf32>
    %cst_42 = arith.constant dense<0.000000e+00> : vector<16x24xf32>
    %157 = tpu.matmul %154, %155, %cst_42 {dimension_numbers = #tpu.dot_dimension_numbers<[1], [1], [0], [0], [0, 0, 1, 0], [], []>} : vector<16x16xf32>, vector<24x16xf32>, vector<16x24xf32> -> vector<16x24xf32>
    %cst_43 = arith.constant 2.500000e-01 : f32
    %158 = vector.broadcast %cst_43 : f32 to vector<16x24xf32>
    %159 = arith.mulf %157, %158 : vector<16x24xf32>
    %cst_44 = arith.constant -1.000000e+30 : f32
    %160 = vector.broadcast %cst_44 : f32 to vector<16x24xf32>
    %161 = arith.select %16, %159, %160 : vector<16x24xi1>, vector<16x24xf32>
    %cst_45 = arith.constant dense<0xFF800000> : vector<16xf32>
    %162 = vector.multi_reduction <maximumf>, %161, %cst_45 [1] : vector<16x24xf32> to vector<16xf32>
    %163 = vector.shape_cast %162 : vector<16xf32> to vector<16x1xf32>
    %164 = vector.broadcast %163 : vector<16x1xf32> to vector<16x24xf32>
    %165 = arith.subf %161, %164 : vector<16x24xf32>
    %166 = math.exp %165 : vector<16x24xf32>
    %cst_46 = arith.constant dense<0.000000e+00> : vector<16xf32>
    %167 = vector.multi_reduction <add>, %166, %cst_46 [1] : vector<16x24xf32> to vector<16xf32>
    %168 = vector.shape_cast %167 : vector<16xf32> to vector<16x1xf32>
    %169 = tpu.reciprocal %168 {approx = true} : vector<16x1xf32> -> vector<16x1xf32>
    %170 = vector.broadcast %169 : vector<16x1xf32> to vector<16x24xf32>
    %171 = arith.mulf %166, %170 : vector<16x24xf32>
    %cst_47 = arith.constant dense<0.000000e+00> : vector<16x16xf32>
    %172 = tpu.matmul %171, %156, %cst_47 {dimension_numbers = #tpu.dot_dimension_numbers<[1], [0], [0], [1], [0, 0, 1, 1], [], []>} : vector<16x24xf32>, vector<24x16xf32>, vector<16x16xf32> -> vector<16x16xf32>
    %173 = vector.extract_strided_slice %107 {offsets = [0, 48], sizes = [16, 16], strides = [1, 1]} : vector<16x64xf32> to vector<16x16xf32>
    %174 = vector.extract_strided_slice %111 {offsets = [0, 48], sizes = [24, 16], strides = [1, 1]} : vector<24x64xf32> to vector<24x16xf32>
    %175 = vector.extract_strided_slice %115 {offsets = [0, 48], sizes = [24, 16], strides = [1, 1]} : vector<24x64xf32> to vector<24x16xf32>
    %cst_48 = arith.constant dense<0.000000e+00> : vector<16x24xf32>
    %176 = tpu.matmul %173, %174, %cst_48 {dimension_numbers = #tpu.dot_dimension_numbers<[1], [1], [0], [0], [0, 0, 1, 0], [], []>} : vector<16x16xf32>, vector<24x16xf32>, vector<16x24xf32> -> vector<16x24xf32>
    %cst_49 = arith.constant 2.500000e-01 : f32
    %177 = vector.broadcast %cst_49 : f32 to vector<16x24xf32>
    %178 = arith.mulf %176, %177 : vector<16x24xf32>
    %cst_50 = arith.constant -1.000000e+30 : f32
    %179 = vector.broadcast %cst_50 : f32 to vector<16x24xf32>
    %180 = arith.select %16, %178, %179 : vector<16x24xi1>, vector<16x24xf32>
    %cst_51 = arith.constant dense<0xFF800000> : vector<16xf32>
    %181 = vector.multi_reduction <maximumf>, %180, %cst_51 [1] : vector<16x24xf32> to vector<16xf32>
    %182 = vector.shape_cast %181 : vector<16xf32> to vector<16x1xf32>
    %183 = vector.broadcast %182 : vector<16x1xf32> to vector<16x24xf32>
    %184 = arith.subf %180, %183 : vector<16x24xf32>
    %185 = math.exp %184 : vector<16x24xf32>
    %cst_52 = arith.constant dense<0.000000e+00> : vector<16xf32>
    %186 = vector.multi_reduction <add>, %185, %cst_52 [1] : vector<16x24xf32> to vector<16xf32>
    %187 = vector.shape_cast %186 : vector<16xf32> to vector<16x1xf32>
    %188 = tpu.reciprocal %187 {approx = true} : vector<16x1xf32> -> vector<16x1xf32>
    %189 = vector.broadcast %188 : vector<16x1xf32> to vector<16x24xf32>
    %190 = arith.mulf %185, %189 : vector<16x24xf32>
    %cst_53 = arith.constant dense<0.000000e+00> : vector<16x16xf32>
    %191 = tpu.matmul %190, %175, %cst_53 {dimension_numbers = #tpu.dot_dimension_numbers<[1], [0], [0], [1], [0, 0, 1, 1], [], []>} : vector<16x24xf32>, vector<24x16xf32>, vector<16x16xf32> -> vector<16x16xf32>
    %192 = tpu.concatenate %134, %153, %172, %191 in 1 : vector<16x16xf32>, vector<16x16xf32>, vector<16x16xf32>, vector<16x16xf32> -> vector<16x64xf32>
    %193 = tpu.concatenate %104, %192 in 0 : vector<16x64xf32>, vector<16x64xf32> -> vector<32x64xf32>
    %194 = arith.truncf %193 : vector<32x64xf32> to vector<32x64xbf16>
    %c0_54 = arith.constant 0 : index
    %c0_55 = arith.constant 0 : index
    %195 = vector.load %arg4[%c0_54, %c0_55] : memref<64x32xbf16, #tpu.memory_space<vmem>>, vector<64x32xbf16>
    %cst_56 = arith.constant dense<0.000000e+00> : vector<32x32xf32>
    %196 = tpu.matmul %194, %195, %cst_56 {dimension_numbers = #tpu.dot_dimension_numbers<[1], [0], [0], [1], [0, 0, 1, 1], [], []>} : vector<32x64xbf16>, vector<64x32xbf16>, vector<32x32xf32> -> vector<32x32xf32>
    %197 = vector.extract_strided_slice %196 {offsets = [0, 0], sizes = [8, 32], strides = [1, 1]} : vector<32x32xf32> to vector<8x32xf32>
    %198 = vector.extract_strided_slice %196 {offsets = [16, 0], sizes = [8, 32], strides = [1, 1]} : vector<32x32xf32> to vector<8x32xf32>
    %199 = tpu.concatenate %197, %198 in 0 : vector<8x32xf32>, vector<8x32xf32> -> vector<16x32xf32>
    %200 = vector.extract_strided_slice %196 {offsets = [8, 0], sizes = [8, 32], strides = [1, 1]} : vector<32x32xf32> to vector<8x32xf32>
    %201 = vector.extract_strided_slice %196 {offsets = [24, 0], sizes = [8, 32], strides = [1, 1]} : vector<32x32xf32> to vector<8x32xf32>
    %202 = tpu.concatenate %200, %201 in 0 : vector<8x32xf32>, vector<8x32xf32> -> vector<16x32xf32>
    %c0_57 = arith.constant 0 : index
    %c0_58 = arith.constant 0 : index
    %203 = vector.load %arg7[%c0_57, %c0_58] : memref<8x64xf32, #tpu.memory_space<vmem>>, vector<8x64xf32>
    %204 = vector.extract_strided_slice %203 {offsets = [0, 0], sizes = [1, 32], strides = [1, 1]} : vector<8x64xf32> to vector<1x32xf32>
    %205 = vector.extract_strided_slice %203 {offsets = [1, 0], sizes = [1, 32], strides = [1, 1]} : vector<8x64xf32> to vector<1x32xf32>
    %206 = vector.extract_strided_slice %203 {offsets = [2, 0], sizes = [1, 64], strides = [1, 1]} : vector<8x64xf32> to vector<1x64xf32>
    %207 = vector.extract_strided_slice %203 {offsets = [3, 0], sizes = [1, 32], strides = [1, 1]} : vector<8x64xf32> to vector<1x32xf32>
    %208 = vector.extract_strided_slice %203 {offsets = [4, 0], sizes = [1, 32], strides = [1, 1]} : vector<8x64xf32> to vector<1x32xf32>
    %209 = vector.extract_strided_slice %203 {offsets = [5, 0], sizes = [1, 32], strides = [1, 1]} : vector<8x64xf32> to vector<1x32xf32>
    %210 = arith.addf %199, %0 : vector<16x32xf32>
    %cst_59 = arith.constant dense<0.000000e+00> : vector<16xf32>
    %211 = vector.multi_reduction <add>, %210, %cst_59 [1] : vector<16x32xf32> to vector<16xf32>
    %212 = vector.shape_cast %211 : vector<16xf32> to vector<16x1xf32>
    %cst_60 = arith.constant 3.200000e+01 : f32
    %213 = vector.broadcast %cst_60 : f32 to vector<16x1xf32>
    %214 = arith.divf %212, %213 : vector<16x1xf32>
    %215 = vector.broadcast %214 : vector<16x1xf32> to vector<16x32xf32>
    %216 = arith.subf %210, %215 : vector<16x32xf32>
    %217 = arith.mulf %216, %216 : vector<16x32xf32>
    %cst_61 = arith.constant dense<0.000000e+00> : vector<16xf32>
    %218 = vector.multi_reduction <add>, %217, %cst_61 [1] : vector<16x32xf32> to vector<16xf32>
    %219 = vector.shape_cast %218 : vector<16xf32> to vector<16x1xf32>
    %cst_62 = arith.constant 3.200000e+01 : f32
    %220 = vector.broadcast %cst_62 : f32 to vector<16x1xf32>
    %221 = arith.divf %219, %220 : vector<16x1xf32>
    %222 = vector.broadcast %214 : vector<16x1xf32> to vector<16x32xf32>
    %223 = arith.subf %210, %222 : vector<16x32xf32>
    %cst_63 = arith.constant 9.99999974E-6 : f32
    %224 = vector.broadcast %cst_63 : f32 to vector<16x1xf32>
    %225 = arith.addf %221, %224 : vector<16x1xf32>
    %226 = math.rsqrt %225 : vector<16x1xf32>
    %227 = vector.broadcast %226 : vector<16x1xf32> to vector<16x32xf32>
    %228 = arith.mulf %223, %227 : vector<16x32xf32>
    %229 = vector.broadcast %204 : vector<1x32xf32> to vector<16x32xf32>
    %230 = arith.mulf %228, %229 : vector<16x32xf32>
    %231 = vector.broadcast %205 : vector<1x32xf32> to vector<16x32xf32>
    %232 = arith.addf %230, %231 : vector<16x32xf32>
    %233 = arith.truncf %232 : vector<16x32xf32> to vector<16x32xbf16>
    %c0_64 = arith.constant 0 : index
    %c0_65 = arith.constant 0 : index
    %234 = vector.load %arg5[%c0_64, %c0_65] : memref<32x64xbf16, #tpu.memory_space<vmem>>, vector<32x64xbf16>
    %cst_66 = arith.constant dense<0.000000e+00> : vector<16x64xf32>
    %235 = tpu.matmul %233, %234, %cst_66 {dimension_numbers = #tpu.dot_dimension_numbers<[1], [0], [0], [1], [0, 0, 1, 1], [], []>} : vector<16x32xbf16>, vector<32x64xbf16>, vector<16x64xf32> -> vector<16x64xf32>
    %236 = vector.broadcast %206 : vector<1x64xf32> to vector<16x64xf32>
    %237 = arith.addf %235, %236 : vector<16x64xf32>
    %cst_67 = arith.constant 0.000000e+00 : f32
    %238 = vector.broadcast %cst_67 : f32 to vector<16x64xf32>
    %239 = arith.maximumf %237, %238 : vector<16x64xf32>
    %240 = arith.truncf %239 : vector<16x64xf32> to vector<16x64xbf16>
    %c0_68 = arith.constant 0 : index
    %c0_69 = arith.constant 0 : index
    %241 = vector.load %arg6[%c0_68, %c0_69] : memref<64x32xbf16, #tpu.memory_space<vmem>>, vector<64x32xbf16>
    %cst_70 = arith.constant dense<0.000000e+00> : vector<16x32xf32>
    %242 = tpu.matmul %240, %241, %cst_70 {dimension_numbers = #tpu.dot_dimension_numbers<[1], [0], [0], [1], [0, 0, 1, 1], [], []>} : vector<16x64xbf16>, vector<64x32xbf16>, vector<16x32xf32> -> vector<16x32xf32>
    %243 = vector.broadcast %207 : vector<1x32xf32> to vector<16x32xf32>
    %244 = arith.addf %242, %243 : vector<16x32xf32>
    %245 = arith.addf %244, %0 : vector<16x32xf32>
    %cst_71 = arith.constant dense<0.000000e+00> : vector<16xf32>
    %246 = vector.multi_reduction <add>, %245, %cst_71 [1] : vector<16x32xf32> to vector<16xf32>
    %247 = vector.shape_cast %246 : vector<16xf32> to vector<16x1xf32>
    %cst_72 = arith.constant 3.200000e+01 : f32
    %248 = vector.broadcast %cst_72 : f32 to vector<16x1xf32>
    %249 = arith.divf %247, %248 : vector<16x1xf32>
    %250 = vector.broadcast %249 : vector<16x1xf32> to vector<16x32xf32>
    %251 = arith.subf %245, %250 : vector<16x32xf32>
    %252 = arith.mulf %251, %251 : vector<16x32xf32>
    %cst_73 = arith.constant dense<0.000000e+00> : vector<16xf32>
    %253 = vector.multi_reduction <add>, %252, %cst_73 [1] : vector<16x32xf32> to vector<16xf32>
    %254 = vector.shape_cast %253 : vector<16xf32> to vector<16x1xf32>
    %cst_74 = arith.constant 3.200000e+01 : f32
    %255 = vector.broadcast %cst_74 : f32 to vector<16x1xf32>
    %256 = arith.divf %254, %255 : vector<16x1xf32>
    %257 = vector.broadcast %249 : vector<16x1xf32> to vector<16x32xf32>
    %258 = arith.subf %245, %257 : vector<16x32xf32>
    %cst_75 = arith.constant 9.99999974E-6 : f32
    %259 = vector.broadcast %cst_75 : f32 to vector<16x1xf32>
    %260 = arith.addf %256, %259 : vector<16x1xf32>
    %261 = math.rsqrt %260 : vector<16x1xf32>
    %262 = vector.broadcast %261 : vector<16x1xf32> to vector<16x32xf32>
    %263 = arith.mulf %258, %262 : vector<16x32xf32>
    %264 = vector.broadcast %208 : vector<1x32xf32> to vector<16x32xf32>
    %265 = arith.mulf %263, %264 : vector<16x32xf32>
    %266 = vector.broadcast %209 : vector<1x32xf32> to vector<16x32xf32>
    %267 = arith.addf %265, %266 : vector<16x32xf32>
    %c0_76 = arith.constant 0 : index
    %c0_77 = arith.constant 0 : index
    %268 = vector.load %arg8[%c0_76, %c0_77] : memref<16x32xf32, #tpu.memory_space<vmem>>, vector<16x32xf32>
    tpu.vector_store %arg8[%c0_76, %c0_77], %267 {strides = array<i32>} : memref<16x32xf32, #tpu.memory_space<vmem>>, vector<16x32xf32>,
    %c0_78 = arith.constant 0 : index
    %c0_79 = arith.constant 0 : index
    %269 = vector.load %arg9[%c0_78, %c0_79] : memref<16x32xf32, #tpu.memory_space<vmem>>, vector<16x32xf32>
    tpu.vector_store %arg9[%c0_78, %c0_79], %202 {strides = array<i32>} : memref<16x32xf32, #tpu.memory_space<vmem>>, vector<16x32xf32>,
    return
  }
  func.func @transform_0(%arg0: i32) -> (i32, i32) {
    %c0_i32 = arith.constant 0 : i32
    %c0_i32_0 = arith.constant 0 : i32
    %c0_i32_1 = arith.constant 0 : i32
    return %c0_i32, %c0_i32_0 : i32, i32
  }
  func.func @transform_1(%arg0: i32) -> (i32, i32) {
    %c0_i32 = arith.constant 0 : i32
    %c0_i32_0 = arith.constant 0 : i32
    %c0_i32_1 = arith.constant 0 : i32
    return %c0_i32, %c0_i32_0 : i32, i32
  }
  func.func @transform_2(%arg0: i32) -> (i32, i32) {
    %c0_i32 = arith.constant 0 : i32
    %c0_i32_0 = arith.constant 0 : i32
    %c0_i32_1 = arith.constant 0 : i32
    return %c0_i32, %c0_i32_0 : i32, i32
  }
  func.func @transform_3(%arg0: i32) -> (i32, i32) {
    %c0_i32 = arith.constant 0 : i32
    %c0_i32_0 = arith.constant 0 : i32
    %c0_i32_1 = arith.constant 0 : i32
    return %c0_i32, %c0_i32_0 : i32, i32
  }
  func.func @transform_4(%arg0: i32) -> (i32, i32) {
    %c0_i32 = arith.constant 0 : i32
    %c0_i32_0 = arith.constant 0 : i32
    %c0_i32_1 = arith.constant 0 : i32
    return %c0_i32, %c0_i32_0 : i32, i32
  }
  func.func @transform_5(%arg0: i32) -> (i32, i32) {
    %c0_i32 = arith.constant 0 : i32
    %c0_i32_0 = arith.constant 0 : i32
    %c0_i32_1 = arith.constant 0 : i32
    return %c0_i32, %c0_i32_0 : i32, i32
  }
  func.func @transform_6(%arg0: i32) -> (i32, i32) {
    %c0_i32 = arith.constant 0 : i32
    %c0_i32_0 = arith.constant 0 : i32
    %c0_i32_1 = arith.constant 0 : i32
    return %c0_i32, %c0_i32_0 : i32, i32
  }
  func.func @transform_7(%arg0: i32) -> (i32, i32) {
    %c0_i32 = arith.constant 0 : i32
    %c0_i32_0 = arith.constant 0 : i32
    %c0_i32_1 = arith.constant 0 : i32
    return %c0_i32, %c0_i32_0 : i32, i32
  }
  func.func @transform_8(%arg0: i32) -> (i32, i32) {
    %c0_i32 = arith.constant 0 : i32
    %c0_i32_0 = arith.constant 0 : i32
    %c0_i32_1 = arith.constant 0 : i32
    return %c0_i32, %c0_i32_0 : i32, i32
  }
}

</mosaic_0001>

<bundles_post_ra>
// kernel: tpu_custom_call.1
= control target key start
LH: loop header
LB: loop body
LE: loop exit
PB: predicated region body
PF: predicated region fallthrough
CT: control target
= control target key end

     0   :  { %14 = vsyncpa [#allocation3], 0  ;;  %v2779_v2 = vmov 0   ;;  %vm61_vm0 = vcmask 261120   ;;  %s3316_s0 = inlined_call_operand.vmem [shape: f32[16,32], index: 0, kind: input, shape index: {}]   ;;  %s3317_s1 = inlined_call_operand.vmem [shape: f32[16,32], index: 1, kind: input, shape index: {}]   ;;  %s3318_s2 = inlined_call_operand.vmem [shape: bf16[32,192], index: 2, kind: input, shape index: {}]   ;;  %s3319_s3 = inlined_call_operand.vmem [shape: bf16[64,32], index: 3, kind: input, shape index: {}]   ;;  %s3320_s4 = inlined_call_operand.vmem [shape: bf16[32,64], index: 4, kind: input, shape index: {}]   ;;  %s3321_s5 = inlined_call_operand.vmem [shape: bf16[64,32], index: 5, kind: input, shape index: {}]   ;;  %s3322_s6 = inlined_call_operand.vmem [shape: f32[8,64], index: 6, kind: input, shape index: {}]   ;;  %s3323_s7 = inlined_call_operand.hbm [shape: f32[16,32], index: 7, kind: output, shape index: {0}]   ;;  %s3324_s8 = inlined_call_operand.hbm [shape: f32[16,32], index: 8, kind: output, shape index: {1}]  }
   0x1   :  { %v2641_v0 = vld [vmem:[%s3318_s2 + $0x4] ss:$8 sps:$4 sm:$0xff]   ;;  %v2643_v1 = vld [vmem:[%s3318_s2] ss:$8 sps:$4 sm:$0xff]   ;;  %100 = vmatprep.mubr.bf16.mxu0 %v2779_v2  ;;  %v2644_v3 = vld [vmem:[%s3318_s2 + $0x14] ss:$8 sps:$4 sm:$0xff]  }
   0x2   :  { %68 = vmatprep.subr.bf16.mxu0 %v2641_v0  ;;  %v2646_v4 = vld [vmem:[%s3318_s2 + $0x10] ss:$8 sps:$4 sm:$0xff]   ;;  %v33_v5 = vld [vmem:[%s3317_s1] sm:$0xff]  ;;  %v34_v6 = vld [vmem:[%s3317_s1 + $0x8] sm:$0xff] }
   0x3   :  { %69 = vmatpush1.bf16.msra.mxu0 %v2643_v1  ;;  %v35_v7 = vpack.c.bf16 %v34_v6, %v33_v5 }
   0x4   :  { %70 = vmatprep.subr.bf16.mxu0 %v2644_v3 }
   0x7   :  { %71 = vmatpush1.bf16.msra.mxu0 %v2646_v4 }
   0xa   :  { %2175 = vmatmul.mubr.msk.bf16.vlgmr.msra.gmra.mrb[0].mxu0 %vm61_vm0, %v35_v7 }
   0xb   :  { %15 = vsyncpa [#allocation5], 0  ;;  %110 = vmatprep.mubr.bf16.mxu0 %v2779_v2  ;;  %v31_v8 = vld [vmem:[%s3316_s0] sm:$0xff]  ;;  %v32_v9 = vld [vmem:[%s3316_s0 + $0x8] sm:$0xff]  ;;  %s2780_s1 = smov 48   ;;  %vm138_vm1 = vcmask 130048   ;;  %v121_v27 = vlaneseq }
   0xc   :  { %v36_v10 = vpack.c.bf16 %v32_v9, %v31_v8  ;;  %s2781_s20 = smov 112   ;;  %vm2900_vm2 = vmpackc.low %vm138_vm1, %vm138_vm1  ;;  %vm226_vm7 = vcmask 195584   ;;  %s2782_s21 = smov 64   ;;  %vm972_vm9 = vcmask 392192   ;;  %vm1849_vm10 = vcmask 523264  }
   0xd   :  { %v2912_v28 = vshrl.u32 %v121_v27, 7  ;;  %v125_v30 = vand.u32 127, %v121_v27  ;;  %s2783_s22 = smov 32   ;;  %s2784_s23 = smov 96   ;;  %vm2788_vm11 = vmmov 0  }
   0xe   :  { %s2785_s24 = smov 16   ;;  %s2786_s25 = smov 80  }
   0xf   :  { %v123_v29 = vadd.s32 8, %v2912_v28  ;;  %vm126_vm3 = vcmp.lt.s32.totalorder %v125_v30, 8 }
  0x11   :  { %v127_v31 = vadd.s32 8, %v123_v29  ;;  %vm128_vm5 = vcmp.le.s32.totalorder %v125_v30, %v123_v29 }
  0x12   :  { %2176 = vmatmul.mubr.msk.bf16.gmra.mrb[4].mxu0 %vm61_vm0, %v36_v10  ;;  %vm2919_vm8 = vmor %vm126_vm3, %vm128_vm5 }
  0x13   :  { %vm129_vm4 = vcmp.le.s32.totalorder %v125_v30, %v127_v31 }
  0x14   :  { %vm2915_vm6 = vmor %vm126_vm3, %vm129_vm4 }
  0xdd   :  { %v2864_v11 = vpop.f32.mrb[0].mxu0 }
  0xde   :  { %334 = vrot.lane.b32.xlu0 %v2864_v11, %s2780_s1  ;;  %v2868_v12 = vpop.f32.mrb[1].mxu0 }
  0xdf   :  { %v2870_v13 = vpop.f32.mrb[2].mxu0 }
  0xe0   :  { %v2872_v14 = vpop.f32.mrb[3].mxu0 }
  0xe5   :  { %v2874_v15 = vpop.f32.mrb[4].mxu0 }
  0xe6   :  { %330 = vrot.lane.b32.xlu1 %v2874_v15, %s2781_s20  ;;  %336 = vrot.lane.b32.xlu0 %v2874_v15, %s2780_s1  ;;  %v2880_v16 = vpop.f32.mrb[5].mxu0 }
  0xe7   :  { %2347 = vmatprep.mubr.msk.f32.mxu1 %vm138_vm1, %v2874_v15  ;;  %v2884_v17 = vpop.f32.mrb[6].mxu0  ;;  %v2888_v18 = vpack.c.bf16 %v2880_v16, %v2868_v12 }
  0xe8   :  { %v2890_v19 = vpop.f32.mrb[7].mxu0 }
  0xe9   :  { %v2894_v20 = vpack.c.bf16 %v2890_v19, %v2872_v14 }
  0xea   :  { %332 = vrot.lane.b32.xlu1 %v2864_v11, %s2781_s20 }
 0x150   :  { %v335_v21 = vpop.permute.xlu0 %334 }
 0x158   :  { %v331_v22 = vpop.permute.xlu1 %330  ;;  %v337_v23 = vpop.permute.xlu0 %336 }
 0x159   :  { %v2527_v25 = vpack.c.bf16 %v337_v23, %v335_v21  ;;  %2365 = vmatprep.mubr.msk.f32.mxu0 %vm138_vm1, %v331_v22 }
 0x15b   :  { %2529 = vmatprep.subr.msk.bf16.mxu0 %vm2900_vm2, %v2527_v25 }
 0x15c   :  { %2532 = vmatpush3.bf16.xpose.msk.msra.mxu0 %vm2900_vm2, %v2527_v25  ;;  %v333_v26 = vpop.permute.xlu1 %332 }
 0x15d   :  { %2363 = vmatprep.subr.msk.mxu0 %vm138_vm1, %v335_v21 }
 0x164   :  { %2364 = vmatpush3.xpose.msk.msra.mxu0 %vm138_vm1, %v335_v21 }
 0x167   :  { %2366 = vmatmul.mubr.msk.f32.vlgmr.msra.gmra.mrb[8].mxu0 %vm138_vm1, %v333_v26 }
 0x23a   :  { %v2367_v32 = vpop.f32.mrb[8].mxu0 }
 0x23b   :  { %v422_v34 = vmul.f32 0.25, %v2367_v32  ;;  %v412_v35 = vpop.f32.mrb[9].mxu0 }
 0x23c   :  { %v421_v37 = vmul.f32 0.25, %v412_v35 }
 0x23d   :  { %v424_v38 = vsel %vm2915_vm6, %v422_v34, -1e+30 }
 0x23e   :  { %v428_v39 = vsel %vm226_vm7, %v424_v38, -inf  ;;  %v423_v40 = vsel %vm2919_vm8, %v421_v37, -1e+30 }
 0x23f   :  { %429 = vmax.xlane.f32.xlu1 %v428_v39  ;;  %v425_v41 = vsel %vm226_vm7, %v423_v40, -inf }
 0x240   :  { %426 = vmax.xlane.f32.xlu0 %v425_v41 }
 0x250   :  { %134 = vrot.lane.b32.xlu1 %v2864_v11, %s2782_s21 }
 0x254   :  { %449 = vrot.lane.b32.xlu1 %v2868_v12, %s2781_s20 }
 0x256   :  { %136 = vrot.lane.b32.xlu0 %v2874_v15, %s2782_s21 }
 0x258   :  { %451 = vrot.lane.b32.xlu1 %v2880_v16, %s2781_s20 }
 0x25c   :  { %542 = vrot.lane.b32.xlu1 %v2874_v15, %s2783_s22 }
 0x260   :  { %538 = vrot.lane.b32.xlu1 %v2864_v11, %s2784_s23 }
 0x2cc   :  { %v430_v42 = vpop.xlane.xlu1 %429 }
 0x2cd   :  { %v432_v43 = vsub.f32 %v424_v38, %v430_v42  ;;  %v427_v44 = vpop.xlane.xlu0 %426 }
 0x2ce   :  { %v431_v45 = vsub.f32 %v423_v40, %v427_v44 }
 0x2cf   :  { %v435_v46 = vmul.f32 1.442695, %v432_v43 }
 0x2d0   :  { %v433_v47 = vmul.f32 1.442695, %v431_v45  ;;  %v135_v48 = vpop.permute.xlu1 %134 }
 0x2d1   :  { %2657 = vpow2.f32 %v435_v46  ;;  %v137_v49 = vpop.permute.xlu0 %136 }
 0x2d2   :  { %v2517_v50 = vpack.c.bf16 %v137_v49, %v135_v48  ;;  %2659 = vpow2.f32 %v433_v47 }
 0x2d4   :  { %v450_v51 = vpop.permute.xlu1 %449  ;;  %2519 = vmatprep.subr.msk.bf16.mxu1 %vm2900_vm2, %v2517_v50 }
 0x2d5   :  { %2522 = vmatpush3.bf16.xpose.msk.msra.mxu1 %vm2900_vm2, %v2517_v50 }
 0x2d6   :  { %2345 = vmatprep.subr.msk.mxu1 %vm138_vm1, %v135_v48 }
 0x2d8   :  { %v452_v52 = vpop.permute.xlu1 %451 }
 0x2d9   :  { %v2533_v53 = vpack.c.bf16 %v452_v52, %v450_v51 }
 0x2db   :  { %v2658_v54 = vpop.eup %2657  ;;  %2534 = vmatprep.subr.bf16.mxu0 %v2533_v53 }
 0x2dc   :  { %2536 = vmatpush3.bf16.msra.mxu0 %v2533_v53  ;;  %v440_v55 = vsel %vm226_vm7, %v2658_v54, 0.0  ;;  %v2660_v56 = vpop.eup %2659  ;;  %v543_v60 = vpop.permute.xlu1 %542 }
 0x2dd   :  { %2372 = vmatprep.subr.mxu0 %v450_v51  ;;  %441 = vadd.xlane.f32.xlu0 %v440_v55  ;;  %v437_v57 = vsel %vm226_vm7, %v2660_v56, 0.0 }
 0x2de   :  { %2346 = vmatpush3.xpose.msk.msra.mxu1 %vm138_vm1, %v135_v48 }
 0x2df   :  { %2524 = vmatprep.subr.bf16.mxu1 %v2888_v18 }
 0x2e0   :  { %2373 = vmatpush3.msra.mxu0 %v450_v51  ;;  %v539_v4 = vpop.permute.xlu1 %538 }
 0x2e1   :  { %2348 = vmatmul.mubr.msk.f32.vlgmr.msra.gmra.mrb[0].mxu1 %vm138_vm1, %v2864_v11  ;;  %438 = vadd.xlane.f32.xlu0 %v437_v57 }
 0x2e2   :  { %2526 = vmatpush3.bf16.msra.mxu1 %v2888_v18 }
 0x2e3   :  { %2354 = vmatprep.subr.mxu1 %v2868_v12 }
 0x2e6   :  { %2355 = vmatpush3.msra.mxu1 %v2868_v12 }
 0x2f7   :  { %540 = vrot.lane.b32.xlu0 %v2864_v11, %s2783_s22 }
 0x2fb   :  { %536 = vrot.lane.b32.xlu0 %v2874_v15, %s2784_s23 }
 0x36a   :  { %v442_v58 = vpop.xlane.xlu0 %441 }
 0x36b   :  { %2661 = vrcp.f32 %v442_v58 }
 0x36e   :  { %v439_v59 = vpop.xlane.xlu0 %438 }
 0x36f   :  { %2663 = vrcp.f32 %v439_v59 }
 0x372   :  { %v541_v61 = vpop.permute.xlu0 %540 }
 0x373   :  { %v2537_v62 = vpack.c.bf16 %v543_v60, %v541_v61 }
 0x375   :  { %2539 = vmatprep.subr.msk.bf16.mxu0 %vm2900_vm2, %v2537_v62  ;;  %v2662_v63 = vpop.eup %2661 }
 0x376   :  { %v446_v2 = vmul.f32 %v2662_v63, %v2658_v54  ;;  %v537_v3 = vpop.permute.xlu0 %536 }
 0x379   :  { %v2664_v0 = vpop.eup %2663 }
 0x37a   :  { %v445_v1 = vmul.f32 %v2664_v0, %v2660_v56 }
 0x37c   :  { %2374 = vmatprep.mubr.msk.f32.mxu0 %vm226_vm7, %v445_v1 }
 0x37d   :  { %2375 = vmatmul.mubr.msk.f32.vlgmr.msra.gmra.mrb[10].mxu0 %vm226_vm7, %v446_v2 }
 0x37e   :  { %2542 = vmatpush3.bf16.xpose.msk.msra.mxu0 %vm2900_vm2, %v2537_v62  ;;  %2383 = vmatprep.mubr.msk.f32.mxu0 %vm138_vm1, %v537_v3 }
 0x37f   :  { %2381 = vmatprep.subr.msk.mxu0 %vm138_vm1, %v541_v61 }
 0x386   :  { %2382 = vmatpush3.xpose.msk.msra.mxu0 %vm138_vm1, %v541_v61 }
 0x389   :  { %2384 = vmatmul.mubr.msk.f32.vlgmr.msra.gmra.mrb[12].mxu0 %vm138_vm1, %v539_v4 }
 0x3b4   :  { %v2349_v5 = vpop.f32.mrb[0].mxu1 }
 0x3b5   :  { %v223_v6 = vmul.f32 0.25, %v2349_v5  ;;  %v213_v7 = vpop.f32.mrb[1].mxu1 }
 0x3b6   :  { %v222_v8 = vmul.f32 0.25, %v213_v7 }
 0x3b7   :  { %v225_v9 = vsel %vm2915_vm6, %v223_v6, -1e+30 }
 0x3b8   :  { %v230_v10 = vsel %vm226_vm7, %v225_v9, -inf  ;;  %v224_v18 = vsel %vm2919_vm8, %v222_v8, -1e+30 }
 0x3b9   :  { %231 = vmax.xlane.f32.xlu1 %v230_v10  ;;  %v227_v21 = vsel %vm226_vm7, %v224_v18, -inf }
 0x3ba   :  { %228 = vmax.xlane.f32.xlu0 %v227_v21 }
 0x446   :  { %v232_v27 = vpop.xlane.xlu1 %231 }
 0x447   :  { %v229_v22 = vpop.xlane.xlu0 %228  ;;  %v234_v31 = vsub.f32 %v225_v9, %v232_v27 }
 0x448   :  { %v233_v23 = vsub.f32 %v224_v18, %v229_v22 }
 0x449   :  { %v237_v35 = vmul.f32 1.442695, %v234_v31 }
 0x44a   :  { %v235_v25 = vmul.f32 1.442695, %v233_v23 }
 0x44c   :  { %2665 = vpow2.f32 %v235_v25 }
 0x44d   :  { %2667 = vpow2.f32 %v237_v35 }
 0x450   :  { %v2975_v26 = vpop.f32.mrb[10].mxu0 }
 0x451   :  { %v2977_v29 = vpop.f32.mrb[11].mxu0 }
 0x452   :  { %v2611_v30 = vpack.i.bf16 %v2975_v26, %v2977_v29 }
 0x456   :  { %v2666_v32 = vpop.eup %2665 }
 0x457   :  { %v239_v34 = vsel %vm226_vm7, %v2666_v32, 0.0  ;;  %v2668_v45 = vpop.eup %2667 }
 0x458   :  { %240 = vadd.xlane.f32.xlu1 %v239_v34  ;;  %v242_v46 = vsel %vm226_vm7, %v2668_v45, 0.0 }
 0x45c   :  { %v2385_v37 = vpop.f32.mrb[12].mxu0 }
 0x45d   :  { %v618_v38 = vpop.f32.mrb[13].mxu0  ;;  %v628_v39 = vmul.f32 0.25, %v2385_v37 }
 0x45e   :  { %v627_v40 = vmul.f32 0.25, %v618_v38 }
 0x45f   :  { %v630_v43 = vsel %vm2915_vm6, %v628_v39, -1e+30 }
 0x460   :  { %v629_v41 = vsel %vm2919_vm8, %v627_v40, -1e+30  ;;  %v634_v44 = vsel %vm226_vm7, %v630_v43, -inf }
 0x461   :  { %v631_v42 = vsel %vm226_vm7, %v629_v41, -inf }
 0x462   :  { %632 = vmax.xlane.f32.xlu0 %v631_v42 }
 0x466   :  { %635 = vmax.xlane.f32.xlu0 %v634_v44 }
 0x469   :  { %653 = vrot.lane.b32.xlu1 %v2868_v12, %s2784_s23 }
 0x46a   :  { %243 = vadd.xlane.f32.xlu0 %v242_v46 }
 0x46d   :  { %744 = vrot.lane.b32.xlu1 %v2864_v11, %s2785_s24 }
 0x4e5   :  { %v241_v47 = vpop.xlane.xlu1 %240 }
 0x4e6   :  { %2669 = vrcp.f32 %v241_v47 }
 0x4e9   :  { %v654_v63 = vpop.permute.xlu1 %653 }
 0x4ed   :  { %v745_v0 = vpop.permute.xlu1 %744 }
 0x4ef   :  { %v633_v48 = vpop.xlane.xlu0 %632 }
 0x4f0   :  { %v2670_v49 = vpop.eup %2669  ;;  %v637_v50 = vsub.f32 %v629_v41, %v633_v48 }
 0x4f1   :  { %v247_v51 = vmul.f32 %v2670_v49, %v2666_v32 }
 0x4f2   :  { %v639_v52 = vmul.f32 1.442695, %v637_v50 }
 0x4f3   :  { %2356 = vmatprep.mubr.msk.f32.mxu1 %vm226_vm7, %v247_v51  ;;  %v636_v53 = vpop.xlane.xlu0 %635 }
 0x4f4   :  { %2671 = vpow2.f32 %v639_v52  ;;  %v638_v54 = vsub.f32 %v630_v43, %v636_v53 }
 0x4f6   :  { %v641_v55 = vmul.f32 1.442695, %v638_v54 }
 0x4f7   :  { %v244_v56 = vpop.xlane.xlu0 %243 }
 0x4f8   :  { %2673 = vpow2.f32 %v641_v55 }
 0x4f9   :  { %2675 = vrcp.f32 %v244_v56 }
 0x4fe   :  { %v2672_v57 = vpop.eup %2671 }
 0x4ff   :  { %v643_v58 = vsel %vm226_vm7, %v2672_v57, 0.0 }
 0x500   :  { %644 = vadd.xlane.f32.xlu1 %v643_v58 }
 0x502   :  { %v2674_v59 = vpop.eup %2673 }
 0x503   :  { %v2676_v60 = vpop.eup %2675  ;;  %v646_v61 = vsel %vm226_vm7, %v2674_v59, 0.0 }
 0x504   :  { %v248_v62 = vmul.f32 %v2676_v60, %v2668_v45  ;;  %647 = vadd.xlane.f32.xlu0 %v646_v61 }
 0x506   :  { %2357 = vmatmul.mubr.msk.f32.vlgmr.msra.gmra.mrb[2].mxu1 %vm226_vm7, %v248_v62 }
 0x511   :  { %746 = vrot.lane.b32.xlu1 %v2874_v15, %s2785_s24 }
 0x515   :  { %742 = vrot.lane.b32.xlu1 %v2864_v11, %s2786_s25 }
 0x51a   :  { %655 = vrot.lane.b32.xlu0 %v2880_v16, %s2784_s23 }
 0x51e   :  { %740 = vrot.lane.b32.xlu0 %v2874_v15, %s2786_s25 }
 0x58d   :  { %v645_v1 = vpop.xlane.xlu1 %644 }
 0x58e   :  { %2677 = vrcp.f32 %v645_v1 }
 0x591   :  { %v648_v2 = vpop.xlane.xlu0 %647  ;;  %v747_v6 = vpop.permute.xlu1 %746 }
 0x592   :  { %2679 = vrcp.f32 %v648_v2  ;;  %v2547_v8 = vpack.c.bf16 %v747_v6, %v745_v0 }
 0x595   :  { %v656_v3 = vpop.permute.xlu0 %655  ;;  %v743_v10 = vpop.permute.xlu1 %742 }
 0x596   :  { %v2543_v4 = vpack.c.bf16 %v656_v3, %v654_v63 }
 0x598   :  { %v2678_v5 = vpop.eup %2677  ;;  %2544 = vmatprep.subr.bf16.mxu1 %v2543_v4 }
 0x599   :  { %2546 = vmatpush3.bf16.msra.mxu1 %v2543_v4  ;;  %v651_v7 = vmul.f32 %v2678_v5, %v2672_v57  ;;  %v741_v15 = vpop.permute.xlu0 %740 }
 0x59a   :  { %2390 = vmatprep.subr.mxu1 %v654_v63 }
 0x59b   :  { %2392 = vmatprep.mubr.msk.f32.mxu1 %vm226_vm7, %v651_v7 }
 0x59c   :  { %v2680_v11 = vpop.eup %2679 }
 0x59d   :  { %v652_v9 = vmul.f32 %v2680_v11, %v2674_v59  ;;  %2391 = vmatpush3.msra.mxu1 %v654_v63 }
 0x59e   :  { %2549 = vmatprep.subr.msk.bf16.mxu1 %vm2900_vm2, %v2547_v8 }
 0x59f   :  { %2393 = vmatmul.mubr.msk.f32.vlgmr.msra.gmra.mrb[4].mxu1 %vm226_vm7, %v652_v9 }
 0x5a0   :  { %2401 = vmatprep.mubr.msk.f32.mxu1 %vm138_vm1, %v741_v15 }
 0x5a4   :  { %2552 = vmatpush3.bf16.xpose.msk.msra.mxu1 %vm2900_vm2, %v2547_v8 }
 0x5a5   :  { %2399 = vmatprep.subr.msk.mxu1 %vm138_vm1, %v745_v0 }
 0x5ac   :  { %2400 = vmatpush3.xpose.msk.msra.mxu1 %vm138_vm1, %v745_v0 }
 0x5ad   :  { %2564 = vmatprep.subr.bf16.mxu1 %v2894_v20 }
 0x5af   :  { %2402 = vmatmul.mubr.msk.f32.vlgmr.msra.gmra.mrb[6].mxu1 %vm138_vm1, %v743_v10 }
 0x5b0   :  { %2566 = vmatpush3.bf16.msra.mxu1 %v2894_v20 }
 0x5b1   :  { %2426 = vmatprep.subr.mxu1 %v2872_v14 }
 0x5b4   :  { %2427 = vmatpush3.msra.mxu1 %v2872_v14 }
 0x5d9   :  { %v3019_v18 = vpop.f32.mrb[2].mxu1 }
 0x5da   :  { %v3021_v21 = vpop.f32.mrb[3].mxu1 }
 0x672   :  { %v3023_v22 = vpop.f32.mrb[4].mxu1 }
 0x673   :  { %v3025_v23 = vpop.f32.mrb[5].mxu1 }
 0x674   :  { %v2616_v25 = vpack.i.bf16 %v3023_v22, %v3025_v23 }
 0x682   :  { %v2403_v27 = vpop.f32.mrb[6].mxu1 }
 0x683   :  { %v832_v31 = vmul.f32 0.25, %v2403_v27  ;;  %v822_v32 = vpop.f32.mrb[7].mxu1 }
 0x684   :  { %v831_v34 = vmul.f32 0.25, %v822_v32 }
 0x685   :  { %v834_v20 = vsel %vm2915_vm6, %v832_v31, -1e+30 }
 0x686   :  { %v838_v35 = vsel %vm226_vm7, %v834_v20, -inf  ;;  %v833_v37 = vsel %vm2919_vm8, %v831_v34, -1e+30 }
 0x687   :  { %839 = vmax.xlane.f32.xlu1 %v838_v35  ;;  %v835_v38 = vsel %vm226_vm7, %v833_v37, -inf }
 0x688   :  { %836 = vmax.xlane.f32.xlu0 %v835_v38 }
 0x698   :  { %857 = vrot.lane.b32.xlu1 %v2868_v12, %s2786_s25 }
 0x69c   :  { %977 = vrot.lane.b32.xlu1 %v2870_v13, %s2782_s21 }
 0x6a0   :  { %979 = vrot.lane.b32.xlu1 %v2884_v17, %s2782_s21 }
 0x714   :  { %v840_v39 = vpop.xlane.xlu1 %839 }
 0x715   :  { %v842_v40 = vsub.f32 %v834_v20, %v840_v39  ;;  %v837_v41 = vpop.xlane.xlu0 %836 }
 0x716   :  { %v841_v42 = vsub.f32 %v833_v37, %v837_v41 }
 0x717   :  { %v845_v43 = vmul.f32 1.442695, %v842_v40 }
 0x718   :  { %v843_v44 = vmul.f32 1.442695, %v841_v42  ;;  %v858_v48 = vpop.permute.xlu1 %857 }
 0x719   :  { %2681 = vpow2.f32 %v845_v43 }
 0x71a   :  { %2683 = vpow2.f32 %v843_v44 }
 0x71c   :  { %v978_v51 = vpop.permute.xlu1 %977 }
 0x720   :  { %v980_v54 = vpop.permute.xlu1 %979 }
 0x721   :  { %v2557_v57 = vpack.c.bf16 %v980_v54, %v978_v51 }
 0x723   :  { %v2682_v45 = vpop.eup %2681 }
 0x724   :  { %v850_v46 = vsel %vm226_vm7, %v2682_v45, 0.0  ;;  %v2684_v47 = vpop.eup %2683 }
 0x725   :  { %851 = vadd.xlane.f32.xlu0 %v850_v46  ;;  %v847_v12 = vsel %vm226_vm7, %v2684_v47, 0.0 }
 0x729   :  { %848 = vadd.xlane.f32.xlu0 %v847_v12 }
 0x73f   :  { %859 = vrot.lane.b32.xlu0 %v2880_v16, %s2786_s25 }
 0x7b2   :  { %v852_v49 = vpop.xlane.xlu0 %851 }
 0x7b3   :  { %2685 = vrcp.f32 %v852_v49 }
 0x7b6   :  { %v849_v50 = vpop.xlane.xlu0 %848 }
 0x7b7   :  { %2687 = vrcp.f32 %v849_v50 }
 0x7ba   :  { %v860_v52 = vpop.permute.xlu0 %859 }
 0x7bb   :  { %v2553_v53 = vpack.c.bf16 %v860_v52, %v858_v48 }
 0x7bd   :  { %2554 = vmatprep.subr.bf16.mxu0 %v2553_v53  ;;  %v2686_v55 = vpop.eup %2685 }
 0x7be   :  { %2556 = vmatpush3.bf16.msra.mxu0 %v2553_v53  ;;  %v856_v59 = vmul.f32 %v2686_v55, %v2682_v45 }
 0x7bf   :  { %2408 = vmatprep.subr.mxu0 %v858_v48 }
 0x7c1   :  { %v2688_v56 = vpop.eup %2687 }
 0x7c2   :  { %2409 = vmatpush3.msra.mxu0 %v858_v48  ;;  %v855_v58 = vmul.f32 %v2688_v56, %v2684_v47 }
 0x7c3   :  { %2559 = vmatprep.subr.msk.bf16.mxu0 %vm2900_vm2, %v2557_v57 }
 0x7c4   :  { %2410 = vmatprep.mubr.msk.f32.mxu0 %vm226_vm7, %v855_v58 }
 0x7c5   :  { %2411 = vmatmul.mubr.msk.f32.vlgmr.msra.gmra.mrb[14].mxu0 %vm226_vm7, %v856_v59 }
 0x7c6   :  { %2419 = vmatprep.mubr.msk.f32.mxu0 %vm138_vm1, %v2884_v17 }
 0x7c9   :  { %2562 = vmatpush3.bf16.xpose.msk.msra.mxu0 %vm2900_vm2, %v2557_v57 }
 0x7ca   :  { %2417 = vmatprep.subr.msk.mxu0 %vm138_vm1, %v978_v51 }
 0x7d1   :  { %2418 = vmatpush3.xpose.msk.msra.mxu0 %vm138_vm1, %v978_v51 }
 0x7d4   :  { %2420 = vmatmul.mubr.msk.f32.vlgmr.msra.gmra.mrb[16].mxu0 %vm138_vm1, %v2870_v13 }
 0x898   :  { %v3057_v16 = vpop.f32.mrb[14].mxu0 }
 0x899   :  { %v3059_v60 = vpop.f32.mrb[15].mxu0 }
 0x89a   :  { %v2626_v61 = vpack.i.bf16 %v3057_v16, %v3059_v60 }
 0x8a7   :  { %v2421_v62 = vpop.f32.mrb[16].mxu0 }
 0x8a8   :  { %v1065_v63 = vmul.f32 0.25, %v2421_v62  ;;  %v1055_v0 = vpop.f32.mrb[17].mxu0 }
 0x8a9   :  { %v1064_v1 = vmul.f32 0.25, %v1055_v0 }
 0x8aa   :  { %v1067_v2 = vsel %vm2915_vm6, %v1065_v63, -1e+30 }
 0x8ab   :  { %v1071_v3 = vsel %vm226_vm7, %v1067_v2, -inf  ;;  %v1066_v4 = vsel %vm2919_vm8, %v1064_v1, -1e+30 }
 0x8ac   :  { %1072 = vmax.xlane.f32.xlu1 %v1071_v3  ;;  %v1068_v5 = vsel %vm226_vm7, %v1066_v4, -inf }
 0x8ad   :  { %1069 = vmax.xlane.f32.xlu0 %v1068_v5 }
 0x8bd   :  { %1175 = vrot.lane.b32.xlu1 %v2870_v13, %s2780_s1 }
 0x8c1   :  { %1171 = vrot.lane.b32.xlu1 %v2884_v17, %s2781_s20 }
 0x8c5   :  { %1173 = vrot.lane.b32.xlu1 %v2870_v13, %s2781_s20 }
 0x939   :  { %v1073_v6 = vpop.xlane.xlu1 %1072 }
 0x93a   :  { %v1075_v7 = vsub.f32 %v1067_v2, %v1073_v6  ;;  %v1070_v11 = vpop.xlane.xlu0 %1069 }
 0x93b   :  { %v1074_v8 = vsub.f32 %v1066_v4, %v1070_v11 }
 0x93c   :  { %v1078_v9 = vmul.f32 1.442695, %v1075_v7 }
 0x93d   :  { %v1076_v15 = vmul.f32 1.442695, %v1074_v8  ;;  %v1176_v35 = vpop.permute.xlu1 %1175 }
 0x93e   :  { %2689 = vpow2.f32 %v1078_v9 }
 0x93f   :  { %2691 = vpow2.f32 %v1076_v15 }
 0x941   :  { %v1172_v43 = vpop.permute.xlu1 %1171 }
 0x945   :  { %v1174_v44 = vpop.permute.xlu1 %1173 }
 0x948   :  { %v2690_v10 = vpop.eup %2689 }
 0x949   :  { %v1083_v27 = vsel %vm226_vm7, %v2690_v10, 0.0  ;;  %v2692_v31 = vpop.eup %2691 }
 0x94a   :  { %1084 = vadd.xlane.f32.xlu0 %v1083_v27  ;;  %v1080_v32 = vsel %vm226_vm7, %v2692_v31, 0.0 }
 0x94e   :  { %1081 = vadd.xlane.f32.xlu0 %v1080_v32 }
 0x964   :  { %1177 = vrot.lane.b32.xlu0 %v2884_v17, %s2780_s1 }
 0x9d7   :  { %v1085_v34 = vpop.xlane.xlu0 %1084 }
 0x9d8   :  { %2693 = vrcp.f32 %v1085_v34 }
 0x9db   :  { %v1082_v20 = vpop.xlane.xlu0 %1081 }
 0x9dc   :  { %2695 = vrcp.f32 %v1082_v20 }
 0x9df   :  { %v1178_v37 = vpop.permute.xlu0 %1177 }
 0x9e0   :  { %v2567_v38 = vpack.c.bf16 %v1178_v37, %v1176_v35 }
 0x9e2   :  { %2569 = vmatprep.subr.msk.bf16.mxu1 %vm2900_vm2, %v2567_v38  ;;  %v2694_v39 = vpop.eup %2693 }
 0x9e3   :  { %v1089_v42 = vmul.f32 %v2694_v39, %v2690_v10 }
 0x9e6   :  { %v2696_v40 = vpop.eup %2695 }
 0x9e7   :  { %v1088_v41 = vmul.f32 %v2696_v40, %v2692_v31 }
 0x9e9   :  { %2428 = vmatprep.mubr.msk.f32.mxu1 %vm226_vm7, %v1088_v41 }
 0x9ea   :  { %2429 = vmatmul.mubr.msk.f32.vlgmr.msra.gmra.mrb[8].mxu1 %vm226_vm7, %v1089_v42 }
 0x9eb   :  { %2572 = vmatpush3.bf16.xpose.msk.msra.mxu1 %vm2900_vm2, %v2567_v38  ;;  %2437 = vmatprep.mubr.msk.f32.mxu1 %vm138_vm1, %v1172_v43 }
 0x9ec   :  { %2435 = vmatprep.subr.msk.mxu1 %vm138_vm1, %v1176_v35 }
 0x9f3   :  { %2436 = vmatpush3.xpose.msk.msra.mxu1 %vm138_vm1, %v1176_v35 }
 0x9f6   :  { %2438 = vmatmul.mubr.msk.f32.vlgmr.msra.gmra.mrb[10].mxu1 %vm138_vm1, %v1174_v44 }
 0xabd   :  { %v3089_v45 = vpop.f32.mrb[8].mxu1 }
 0xabe   :  { %v3091_v46 = vpop.f32.mrb[9].mxu1 }
 0xac9   :  { %v2439_v47 = vpop.f32.mrb[10].mxu1 }
 0xaca   :  { %v1263_v12 = vmul.f32 0.25, %v2439_v47  ;;  %v1253_v48 = vpop.f32.mrb[11].mxu1 }
 0xacb   :  { %v1262_v49 = vmul.f32 0.25, %v1253_v48 }
 0xacc   :  { %v1265_v50 = vsel %vm2915_vm6, %v1263_v12, -1e+30 }
 0xacd   :  { %v1269_v51 = vsel %vm226_vm7, %v1265_v50, -inf  ;;  %v1264_v52 = vsel %vm2919_vm8, %v1262_v49, -1e+30 }
 0xace   :  { %1270 = vmax.xlane.f32.xlu1 %v1269_v51  ;;  %v1266_v53 = vsel %vm226_vm7, %v1264_v52, -inf }
 0xacf   :  { %1267 = vmax.xlane.f32.xlu0 %v1266_v53 }
 0xadf   :  { %1290 = vrot.lane.b32.xlu1 %v2872_v14, %s2781_s20 }
 0xae3   :  { %1381 = vrot.lane.b32.xlu1 %v2870_v13, %s2783_s22 }
 0xae7   :  { %1383 = vrot.lane.b32.xlu1 %v2884_v17, %s2783_s22 }
 0xaeb   :  { %1379 = vrot.lane.b32.xlu1 %v2870_v13, %s2784_s23 }
 0xb5b   :  { %v1271_v54 = vpop.xlane.xlu1 %1270 }
 0xb5c   :  { %v1273_v55 = vsub.f32 %v1265_v50, %v1271_v54  ;;  %v1268_v56 = vpop.xlane.xlu0 %1267 }
 0xb5d   :  { %v1272_v57 = vsub.f32 %v1264_v52, %v1268_v56 }
 0xb5e   :  { %v1276_v58 = vmul.f32 1.442695, %v1273_v55 }
 0xb5f   :  { %v1274_v59 = vmul.f32 1.442695, %v1272_v57  ;;  %v1291_v2 = vpop.permute.xlu1 %1290 }
 0xb60   :  { %2697 = vpow2.f32 %v1276_v58 }
 0xb61   :  { %2699 = vpow2.f32 %v1274_v59 }
 0xb63   :  { %v1382_v5 = vpop.permute.xlu1 %1381 }
 0xb67   :  { %v1384_v11 = vpop.permute.xlu1 %1383 }
 0xb68   :  { %v2577_v15 = vpack.c.bf16 %v1384_v11, %v1382_v5 }
 0xb6a   :  { %v2698_v62 = vpop.eup %2697 }
 0xb6b   :  { %v1281_v63 = vsel %vm226_vm7, %v2698_v62, 0.0  ;;  %v2700_v0 = vpop.eup %2699  ;;  %v1380_v32 = vpop.permute.xlu1 %1379 }
 0xb6c   :  { %1282 = vadd.xlane.f32.xlu0 %v1281_v63  ;;  %v1278_v1 = vsel %vm226_vm7, %v2700_v0, 0.0 }
 0xb70   :  { %1279 = vadd.xlane.f32.xlu0 %v1278_v1 }
 0xb86   :  { %1292 = vrot.lane.b32.xlu0 %v2890_v19, %s2781_s20 }
 0xb8a   :  { %1377 = vrot.lane.b32.xlu0 %v2884_v17, %s2784_s23 }
 0xbf9   :  { %v1283_v3 = vpop.xlane.xlu0 %1282 }
 0xbfa   :  { %2701 = vrcp.f32 %v1283_v3 }
 0xbfd   :  { %v1280_v4 = vpop.xlane.xlu0 %1279 }
 0xbfe   :  { %2703 = vrcp.f32 %v1280_v4 }
 0xc01   :  { %v1293_v6 = vpop.permute.xlu0 %1292 }
 0xc02   :  { %v2573_v7 = vpack.c.bf16 %v1293_v6, %v1291_v2 }
 0xc04   :  { %2574 = vmatprep.subr.bf16.mxu0 %v2573_v7  ;;  %v2702_v8 = vpop.eup %2701 }
 0xc05   :  { %2576 = vmatpush3.bf16.msra.mxu0 %v2573_v7  ;;  %v1287_v27 = vmul.f32 %v2702_v8, %v2698_v62  ;;  %v1378_v31 = vpop.permute.xlu0 %1377 }
 0xc06   :  { %2444 = vmatprep.subr.mxu0 %v1291_v2 }
 0xc08   :  { %v2704_v9 = vpop.eup %2703 }
 0xc09   :  { %2445 = vmatpush3.msra.mxu0 %v1291_v2  ;;  %v1286_v10 = vmul.f32 %v2704_v9, %v2700_v0 }
 0xc0a   :  { %2579 = vmatprep.subr.msk.bf16.mxu0 %vm2900_vm2, %v2577_v15 }
 0xc0b   :  { %2446 = vmatprep.mubr.msk.f32.mxu0 %vm226_vm7, %v1286_v10 }
 0xc0c   :  { %2447 = vmatmul.mubr.msk.f32.vlgmr.msra.gmra.mrb[18].mxu0 %vm226_vm7, %v1287_v27 }
 0xc0d   :  { %2455 = vmatprep.mubr.msk.f32.mxu0 %vm138_vm1, %v1378_v31 }
 0xc10   :  { %2582 = vmatpush3.bf16.xpose.msk.msra.mxu0 %vm2900_vm2, %v2577_v15 }
 0xc11   :  { %2453 = vmatprep.subr.msk.mxu0 %vm138_vm1, %v1382_v5 }
 0xc18   :  { %2454 = vmatpush3.xpose.msk.msra.mxu0 %vm138_vm1, %v1382_v5 }
 0xc1b   :  { %2456 = vmatmul.mubr.msk.f32.vlgmr.msra.gmra.mrb[20].mxu0 %vm138_vm1, %v1380_v32 }
 0xcdf   :  { %v3123_v34 = vpop.f32.mrb[18].mxu0 }
 0xce0   :  { %v3125_v20 = vpop.f32.mrb[19].mxu0 }
 0xce1   :  { %v2621_v35 = vpack.i.bf16 %v3123_v34, %v3125_v20  ;;  %v2647_v34 = vld [vmem:[%s3319_s3] sm:$0xff]   ;;  %v2648_v20 = vld [vmem:[%s3319_s3 + $0x8] sm:$0xff]  }
 0xcee   :  { %v2457_v37 = vpop.f32.mrb[20].mxu0 }
 0xcef   :  { %v1469_v38 = vmul.f32 0.25, %v2457_v37  ;;  %v1459_v39 = vpop.f32.mrb[21].mxu0 }
 0xcf0   :  { %v1468_v40 = vmul.f32 0.25, %v1459_v39 }
 0xcf1   :  { %v1471_v41 = vsel %vm2915_vm6, %v1469_v38, -1e+30 }
 0xcf2   :  { %v1475_v42 = vsel %vm226_vm7, %v1471_v41, -inf  ;;  %v1470_v43 = vsel %vm2919_vm8, %v1468_v40, -1e+30 }
 0xcf3   :  { %1476 = vmax.xlane.f32.xlu1 %v1475_v42  ;;  %v1472_v44 = vsel %vm226_vm7, %v1470_v43, -inf }
 0xcf4   :  { %1473 = vmax.xlane.f32.xlu0 %v1472_v44 }
 0xd04   :  { %1494 = vrot.lane.b32.xlu1 %v2872_v14, %s2784_s23 }
 0xd08   :  { %1585 = vrot.lane.b32.xlu1 %v2870_v13, %s2785_s24 }
 0xd0c   :  { %1587 = vrot.lane.b32.xlu1 %v2884_v17, %s2785_s24 }
 0xd10   :  { %1583 = vrot.lane.b32.xlu1 %v2870_v13, %s2786_s25 }
 0xd80   :  { %v1477_v47 = vpop.xlane.xlu1 %1476 }
 0xd81   :  { %v1479_v12 = vsub.f32 %v1471_v41, %v1477_v47  ;;  %v1474_v48 = vpop.xlane.xlu0 %1473 }
 0xd82   :  { %v1478_v49 = vsub.f32 %v1470_v43, %v1474_v48 }
 0xd83   :  { %v1482_v50 = vmul.f32 1.442695, %v1479_v12 }
 0xd84   :  { %v1480_v51 = vmul.f32 1.442695, %v1478_v49  ;;  %v1495_v13 = vpop.permute.xlu1 %1494 }
 0xd85   :  { %2705 = vpow2.f32 %v1482_v50 }
 0xd86   :  { %2707 = vpow2.f32 %v1480_v51 }
 0xd88   :  { %v1586_v58 = vpop.permute.xlu1 %1585 }
 0xd8c   :  { %v1588_v63 = vpop.permute.xlu1 %1587 }
 0xd8d   :  { %v2587_v2 = vpack.c.bf16 %v1588_v63, %v1586_v58 }
 0xd8f   :  { %v2706_v52 = vpop.eup %2705 }
 0xd90   :  { %v1487_v53 = vsel %vm226_vm7, %v2706_v52, 0.0  ;;  %v2708_v54 = vpop.eup %2707  ;;  %v1584_v5 = vpop.permute.xlu1 %1583 }
 0xd91   :  { %1488 = vadd.xlane.f32.xlu0 %v1487_v53  ;;  %v1484_v55 = vsel %vm226_vm7, %v2708_v54, 0.0 }
 0xd95   :  { %1485 = vadd.xlane.f32.xlu0 %v1484_v55 }
 0xdab   :  { %1496 = vrot.lane.b32.xlu0 %v2890_v19, %s2784_s23 }
 0xdaf   :  { %1581 = vrot.lane.b32.xlu0 %v2884_v17, %s2786_s25 }
 0xe1e   :  { %v1489_v56 = vpop.xlane.xlu0 %1488 }
 0xe1f   :  { %2709 = vrcp.f32 %v1489_v56 }
 0xe22   :  { %v1486_v57 = vpop.xlane.xlu0 %1485 }
 0xe23   :  { %2711 = vrcp.f32 %v1486_v57  ;;  %v2650_v57 = vld [vmem:[%s3319_s3 + $0x18] sm:$0xff]  }
 0xe26   :  { %v1497_v59 = vpop.permute.xlu0 %1496 }
 0xe27   :  { %v2583_v62 = vpack.c.bf16 %v1497_v59, %v1495_v13 }
 0xe29   :  { %2584 = vmatprep.subr.bf16.mxu1 %v2583_v62  ;;  %v2710_v0 = vpop.eup %2709 }
 0xe2a   :  { %2586 = vmatpush3.bf16.msra.mxu1 %v2583_v62  ;;  %v1493_v4 = vmul.f32 %v2710_v0, %v2706_v52  ;;  %v1582_v17 = vpop.permute.xlu0 %1581 }
 0xe2b   :  { %2462 = vmatprep.subr.mxu1 %v1495_v13 }
 0xe2d   :  { %v2712_v1 = vpop.eup %2711 }
 0xe2e   :  { %2463 = vmatpush3.msra.mxu1 %v1495_v13  ;;  %v1492_v3 = vmul.f32 %v2712_v1, %v2708_v54 }
 0xe2f   :  { %2589 = vmatprep.subr.msk.bf16.mxu1 %vm2900_vm2, %v2587_v2 }
 0xe30   :  { %2464 = vmatprep.mubr.msk.f32.mxu1 %vm226_vm7, %v1492_v3 }
 0xe31   :  { %2465 = vmatmul.mubr.msk.f32.vlgmr.msra.gmra.mrb[12].mxu1 %vm226_vm7, %v1493_v4 }
 0xe32   :  { %2473 = vmatprep.mubr.msk.f32.mxu1 %vm138_vm1, %v1582_v17 }
 0xe35   :  { %2592 = vmatpush3.bf16.xpose.msk.msra.mxu1 %vm2900_vm2, %v2587_v2 }
 0xe36   :  { %2471 = vmatprep.subr.msk.mxu1 %vm138_vm1, %v1586_v58 }
 0xe3d   :  { %2472 = vmatpush3.xpose.msk.msra.mxu1 %vm138_vm1, %v1586_v58 }
 0xe40   :  { %2474 = vmatmul.mubr.msk.f32.vlgmr.msra.gmra.mrb[14].mxu1 %vm138_vm1, %v1584_v5 }
 0xf04   :  { %v2466_v6 = vpop.f32.mrb[12].mxu1 }
 0xf05   :  { %v1572_v7 = vpop.f32.mrb[13].mxu1 }
 0xf06   :  { %v2631_v11 = vpack.i.bf16 %v2466_v6, %v1572_v7 }
 0xf13   :  { %v2475_v8 = vpop.f32.mrb[14].mxu1 }
 0xf14   :  { %v1673_v9 = vmul.f32 0.25, %v2475_v8  ;;  %v1663_v15 = vpop.f32.mrb[15].mxu1 }
 0xf15   :  { %v1672_v10 = vmul.f32 0.25, %v1663_v15 }
 0xf16   :  { %v1675_v27 = vsel %vm2915_vm6, %v1673_v9, -1e+30 }
 0xf17   :  { %v1679_v24 = vsel %vm226_vm7, %v1675_v27, -inf  ;;  %v1674_v31 = vsel %vm2919_vm8, %v1672_v10, -1e+30 }
 0xf18   :  { %1680 = vmax.xlane.f32.xlu1 %v1679_v24  ;;  %v1676_v32 = vsel %vm226_vm7, %v1674_v31, -inf }
 0xf19   :  { %1677 = vmax.xlane.f32.xlu0 %v1676_v32  ;;  %v3230_v32 = vld [vmem:[%s3316_s0] sm:$0xff] }
 0xf29   :  { %1698 = vrot.lane.b32.xlu1 %v2872_v14, %s2786_s25 }
 0xf2d   :  { %2612 = vrot.lane.b32.xlu1 %v2611_v30, %s2785_s24 }
 0xf31   :  { %2617 = vrot.lane.b32.xlu1 %v2616_v25, %s2783_s22 }
 0xf35   :  { %2627 = vrot.lane.b32.xlu1 %v2626_v61, %s2780_s1 }
 0xfa5   :  { %v1681_v33 = vpop.xlane.xlu1 %1680 }
 0xfa6   :  { %v1683_v36 = vsub.f32 %v1675_v27, %v1681_v33  ;;  %v1678_v37 = vpop.xlane.xlu0 %1677 }
 0xfa7   :  { %v1682_v38 = vsub.f32 %v1674_v31, %v1678_v37 }
 0xfa8   :  { %v1686_v14 = vmul.f32 1.442695, %v1683_v36 }
 0xfa9   :  { %v1684_v39 = vmul.f32 1.442695, %v1682_v38  ;;  %v1699_v40 = vpop.permute.xlu1 %1698 }
 0xfaa   :  { %2713 = vpow2.f32 %v1686_v14 }
 0xfab   :  { %2715 = vpow2.f32 %v1684_v39 }
 0xfad   :  { %v2613_v26 = vpop.permute.xlu1 %2612 }
 0xfae   :  { %v2615_v30 = vunpack.i.h.bf16 %v2613_v26  ;;  %v2614_v41 = vunpack.i.l.bf16 %v2613_v26 }
 0xfb0   :  { %v969_v61 = vsel %vm138_vm1, %v3019_v18, %v2615_v30  ;;  %v968_v43 = vsel %vm138_vm1, %v3021_v21, %v2614_v41 }
 0xfb1   :  { %v2618_v29 = vpop.permute.xlu1 %2617 }
 0xfb2   :  { %v2620_v22 = vunpack.i.h.bf16 %v2618_v29  ;;  %v2619_v23 = vunpack.i.l.bf16 %v2618_v29 }
 0xfb4   :  { %v2714_v25 = vpop.eup %2713  ;;  %v970_v12 = vsel %vm61_vm0, %v968_v43, %v2619_v23  ;;  %v971_v48 = vsel %vm61_vm0, %v969_v61, %v2620_v22  ;;  %v2652_v61 = vld [vmem:[%s3320_s4 + $0x8] sm:$0xff]  }
 0xfb5   :  { %v2628_v42 = vpop.permute.xlu1 %2627  ;;  %v1691_v16 = vsel %vm226_vm7, %v2714_v25, 0.0  ;;  %v2716_v60 = vpop.eup %2715 }
 0xfb6   :  { %v2630_v44 = vunpack.i.h.bf16 %v2628_v42  ;;  %v2629_v47 = vunpack.i.l.bf16 %v2628_v42  ;;  %1692 = vadd.xlane.f32.xlu0 %v1691_v16  ;;  %v1688_v52 = vsel %vm226_vm7, %v2716_v60, 0.0  ;;  %v2651_v16 = vld [vmem:[%s3320_s4] sm:$0xff]  }
 0xfb8   :  { %v973_v49 = vsel %vm972_vm9, %v970_v12, %v2629_v47  ;;  %v974_v50 = vsel %vm972_vm9, %v971_v48, %v2630_v44 }
 0xfb9   :  { %v1815_v51 = vpack.c.bf16 %v974_v50, %v973_v49  ;;  %v1937_v50 = vsub.s32 0, %v2912_v28 }
 0xfba   :  { %1689 = vadd.xlane.f32.xlu0 %v1688_v52 }
 0xfd0   :  { %1700 = vrot.lane.b32.xlu0 %v2890_v19, %s2786_s25 }
 0xfd4   :  { %2622 = vrot.lane.b32.xlu0 %v2621_v35, %s2785_s24  ;;  %v2649_v35 = vld [vmem:[%s3319_s3 + $0x10] sm:$0xff]  }
 0xfd8   :  { %2632 = vrot.lane.b32.xlu0 %v2631_v11, %s2783_s22 }
0x1043   :  { %v1693_v18 = vpop.xlane.xlu0 %1692 }
0x1044   :  { %2717 = vrcp.f32 %v1693_v18 }
0x1047   :  { %v1690_v21 = vpop.xlane.xlu0 %1689 }
0x1048   :  { %2719 = vrcp.f32 %v1690_v21 }
0x104b   :  { %v1701_v53 = vpop.permute.xlu0 %1700 }
0x104c   :  { %v2593_v54 = vpack.c.bf16 %v1701_v53, %v1699_v40  ;;  %v1943_v53 = vsub.s32 1, %v2912_v28 }
0x104e   :  { %2594 = vmatprep.subr.bf16.mxu0 %v2593_v54  ;;  %v2718_v55 = vpop.eup %2717 }
0x104f   :  { %2596 = vmatpush3.bf16.msra.mxu0 %v2593_v54  ;;  %v1697_v56 = vmul.f32 %v2718_v55, %v2714_v25  ;;  %v2623_v63 = vpop.permute.xlu0 %2622 }
0x1050   :  { %2480 = vmatprep.subr.mxu0 %v1699_v40  ;;  %v2625_v1 = vunpack.i.h.bf16 %v2623_v63  ;;  %v2624_v2 = vunpack.i.l.bf16 %v2623_v63  ;;  %v1954_v63 = vsub.s32 2, %v2912_v28 }
0x1052   :  { %v2720_v13 = vpop.eup %2719  ;;  %v1810_v5 = vsel %vm138_vm1, %v3089_v45, %v2625_v1  ;;  %v1809_v6 = vsel %vm138_vm1, %v3091_v46, %v2624_v2  ;;  %v3224_v45 = vld [vmem:[%s3316_s0 + $0x8] sm:$0xff] }
0x1053   :  { %2481 = vmatpush3.msra.mxu0 %v1699_v40  ;;  %v1696_v19 = vmul.f32 %v2720_v13, %v2716_v60  ;;  %v2633_v0 = vpop.permute.xlu0 %2632  ;;  %v2787_v60 = vmov 0.0  }
0x1054   :  { %2485 = vmatprep.subr.bf16.mxu0 %v2647_v34  ;;  %v2635_v3 = vunpack.i.h.bf16 %v2633_v0  ;;  %v2634_v4 = vunpack.i.l.bf16 %v2633_v0  ;;  %2497 = vmatprep.subr.bf16.mxu1 %v2787_v60 }
0x1055   :  { %2482 = vmatprep.mubr.msk.f32.mxu0 %vm226_vm7, %v1696_v19  ;;  %2498 = vmatpush3.bf16.msra.mxu1 %v2651_v16 }
0x1056   :  { %2483 = vmatmul.mubr.msk.f32.vlgmr.msra.gmra.mrb[22].mxu0 %vm226_vm7, %v1697_v56  ;;  %v1811_v8 = vsel %vm61_vm0, %v1809_v6, %v2634_v4  ;;  %v1812_v9 = vsel %vm61_vm0, %v1810_v5, %v2635_v3  ;;  %2499 = vmatprep.subr.bf16.mxu1 %v2787_v60 }
0x1057   :  { %2493 = vmatprep.mubr.msk.bf16.mxu0 %vm1849_vm10, %v1815_v51  ;;  %2486 = vmatpush3.bf16.msra.mxu0 %v2647_v34  ;;  %v3250_v51 = vld [vmem:[%s3322_s6] sm:$0xff] }
0x1058   :  { %2487 = vmatprep.subr.bf16.mxu0 %v2648_v20  ;;  %2501 = vmatprep.mubr.msk.bf16.mxu1 %vm2788_vm11, %v2787_v60  ;;  %v1938_v18 = vrot.slane %v3250_v51, %v1937_v50  ;;  %v1944_v19 = vrot.slane %v3250_v51, %v1943_v53  ;;  %v1955_v0 = vrot.slane %v3250_v51, %v1954_v63 }
0x1059   :  { %2500 = vmatpush3.bf16.msra.mxu1 %v2652_v61 }
0x105a   :  { %2505 = vmatprep.subr.bf16.mxu1 %v2787_v60 }
0x105b   :  { %2488 = vmatpush3.bf16.msra.mxu0 %v2648_v20 }
0x105c   :  { %2489 = vmatprep.subr.bf16.mxu0 %v2649_v35 }
0x105f   :  { %2490 = vmatpush3.bf16.msra.mxu0 %v2649_v35  ;;  %v2653_v35 = vld [vmem:[%s3321_s5] sm:$0xff]  }
0x1060   :  { %2491 = vmatprep.subr.bf16.mxu0 %v2650_v57 }
0x1063   :  { %2492 = vmatpush3.bf16.msra.mxu0 %v2650_v57 }
0x1129   :  { %v2484_v58 = vpop.f32.mrb[22].mxu0 }
0x112a   :  { %v1776_v59 = vpop.f32.mrb[23].mxu0 }
0x112b   :  { %v2636_v62 = vpack.i.bf16 %v2484_v58, %v1776_v59  ;;  %v2654_v58 = vld [vmem:[%s3321_s5 + $0x8] sm:$0xff]   ;;  %v2655_v59 = vld [vmem:[%s3321_s5 + $0x10] sm:$0xff]  }
0x112d   :  { %2637 = vrot.lane.b32.xlu1 %v2636_v62, %s2780_s1  ;;  %v2656_v62 = vld [vmem:[%s3321_s5 + $0x18] sm:$0xff]   ;;  %s2789_s5 = smov [#allocation4]  }
0x112e   :  { %s2156_s24 = sshll.u32 %s2789_s5, 4  ;;  %s2157_s24 = int_to_ptr.vmem [resolvable:$true] %s2156_s24 }
0x112f   :  { %s2731_s25 = scalar_lea.vmem %s2157_s24, 256  ;;  %p2736_p1 = scmp.lt.s32.totalorder %s2157_s24, %s2157_s24 }
0x1130   :  { %p2732_p0 = scmp.ne.s32.totalorder %s2157_s24, %s2731_s25  ;;  %p2737_p2 = scmp.lt.s32.totalorder %s2731_s25, %s2731_s25 }
0x1132   :  { %p2738_p3 = por %p2737_p2, %p2736_p1 }
0x1134   :  { %p2739_p4 = pnand %p2738_p3, %p2732_p0 }
0x119f   :  { %v2638_v17 = vpop.permute.xlu1 %2637 }
0x11a0   :  { %v2640_v7 = vunpack.i.h.bf16 %v2638_v17  ;;  %v2639_v11 = vunpack.i.l.bf16 %v2638_v17 }
0x11a2   :  { %v1813_v15 = vsel %vm972_vm9, %v1811_v8, %v2639_v11  ;;  %v1814_v10 = vsel %vm972_vm9, %v1812_v9, %v2640_v7  ;;  %v2025_v8 = vsub.s32 3, %v2912_v28 }
0x11a3   :  { %v1816_v27 = vpack.c.bf16 %v1814_v10, %v1813_v15 }
0x11a4   :  { %v2026_v9 = vrot.slane %v3250_v51, %v2025_v8 }
0x11a5   :  { %2494 = vmatmul.mubr.msk.bf16.vlgmr.msra.gmra.mrb[24].mxu0 %vm1849_vm10, %v1816_v27 }
0x1278   :  { %v2495_v24 = vpop.f32.mrb[24].mxu0 }
0x1279   :  { %v1907_v46 = vadd.f32 %v3224_v45, %v2495_v24  ;;  %v1890_v31 = vpop.f32.mrb[25].mxu0 }
0x127a   :  { %v1906_v33 = vadd.f32 %v3230_v32, %v1890_v31  ;;  %v2496_v36 = vpop.f32.mrb[26].mxu0 }
0x127b   :  { %2138 = vst.msk [vmem:[#allocation4 + $0x8] sm:$0xff] %vm61_vm0, %v2496_v36  ;;  %v1893_v37 = vpop.f32.mrb[27].mxu0  ;;  %v1911_v38 = vsel %vm61_vm0, %v1907_v46, 0.0 }
0x127c   :  { %2137 = vst.msk [vmem:[#allocation4] sm:$0xff] %vm61_vm0, %v1893_v37  ;;  %1912 = vadd.xlane.f32.xlu1 %v1911_v38  ;;  %v1908_v14 = vsel %vm61_vm0, %v1906_v33, 0.0 }
0x127d   :  { %1909 = vadd.xlane.f32.xlu0 %v1908_v14 }
0x1309   :  { %v1913_v39 = vpop.xlane.xlu1 %1912 }
0x130a   :  { %v1916_v40 = vmul.f32 0.03125, %v1913_v39  ;;  %v1910_v26 = vpop.xlane.xlu0 %1909 }
0x130b   :  { %v1915_v29 = vmul.f32 0.03125, %v1910_v26 }
0x130c   :  { %v1918_v30 = vsub.f32 %v1907_v46, %v1916_v40 }
0x130d   :  { %v1917_v41 = vsub.f32 %v1906_v33, %v1915_v29 }
0x130e   :  { %v1920_v25 = vmul.f32 %v1918_v30, %v1918_v30 }
0x130f   :  { %v1919_v22 = vmul.f32 %v1917_v41, %v1917_v41 }
0x1310   :  { %v1924_v42 = vsel %vm61_vm0, %v1920_v25, 0.0 }
0x1311   :  { %v1921_v23 = vsel %vm61_vm0, %v1919_v22, 0.0 }
0x1312   :  { %1922 = vadd.xlane.f32.xlu0 %v1921_v23 }
0x1316   :  { %1925 = vadd.xlane.f32.xlu0 %v1924_v42 }
0x139f   :  { %v1923_v43 = vpop.xlane.xlu0 %1922 }
0x13a0   :  { %v1927_v44 = vmul.f32 0.03125, %v1923_v43 }
0x13a2   :  { %v1929_v47 = vadd.f32 1e-05, %v1927_v44 }
0x13a3   :  { %v1926_v12 = vpop.xlane.xlu0 %1925 }
0x13a4   :  { %2721 = vrsqrt.f32 %v1929_v47  ;;  %v1928_v48 = vmul.f32 0.03125, %v1926_v12 }
0x13a6   :  { %v1930_v49 = vadd.f32 1e-05, %v1928_v48 }
0x13a8   :  { %2723 = vrsqrt.f32 %v1930_v49 }
0x13ae   :  { %v2722_v52 = vpop.eup %2721 }
0x13af   :  { %v1933_v21 = vmul.f32 %v2722_v52, %v1917_v41 }
0x13b1   :  { %v1939_v55 = vmul.f32 %v1938_v18, %v1933_v21 }
0x13b2   :  { %v2724_v54 = vpop.eup %2723 }
0x13b3   :  { %v1934_v13 = vmul.f32 %v2724_v54, %v1918_v30  ;;  %v1945_v34 = vadd.f32 %v1944_v19, %v1939_v55 }
0x13b5   :  { %v1940_v56 = vmul.f32 %v1938_v18, %v1934_v13 }
0x13b7   :  { %v1946_v20 = vadd.f32 %v1944_v19, %v1940_v56 }
0x13b9   :  { %v1947_v57 = vpack.c.bf16 %v1946_v20, %v1945_v34 }
0x13bb   :  { %2502 = vmatmul.mubr.msk.bf16.vlgmr.msra.gmra.mrb[16].mxu1 %vm61_vm0, %v1947_v57 }
0x13bc   :  { %2506 = vmatpush3.bf16.msra.mxu1 %v2653_v35  ;;  %2513 = vmatprep.mubr.msk.bf16.mxu1 %vm2788_vm11, %v2787_v60 }
0x13bd   :  { %2507 = vmatprep.subr.bf16.mxu1 %v2787_v60 }
0x13c0   :  { %2508 = vmatpush3.bf16.msra.mxu1 %v2654_v58 }
0x13c1   :  { %2509 = vmatprep.subr.bf16.mxu1 %v2787_v60 }
0x13c4   :  { %2510 = vmatpush3.bf16.msra.mxu1 %v2655_v59 }
0x13c5   :  { %2511 = vmatprep.subr.bf16.mxu1 %v2787_v60 }
0x13c8   :  { %2512 = vmatpush3.bf16.msra.mxu1 %v2656_v62 }
0x148e   :  { %v2005_v1 = vpop.f32.mrb[16].mxu1 }
0x148f   :  { %v2006_v2 = vadd.f32 %v2005_v1, %v1955_v0  ;;  %v2503_v3 = vpop.f32.mrb[17].mxu1 }
0x1490   :  { %v2008_v4 = vpop.f32.mrb[18].mxu1 }
0x1491   :  { %v2009_v17 = vadd.f32 %v2008_v4, %v1955_v0  ;;  %v2504_v5 = vpop.f32.mrb[19].mxu1  ;;  %v2012_v6 = vmax.f32 %v2006_v2, 0.0 }
0x1493   :  { %v2013_v7 = vmax.f32 %v2009_v17, 0.0 }
0x1495   :  { %v2014_v11 = vpack.c.bf16 %v2013_v7, %v2012_v6 }
0x1497   :  { %2514 = vmatmul.mubr.msk.bf16.vlgmr.msra.gmra.mrb[20].mxu1 %vm1849_vm10, %v2014_v11 }
0x156a   :  { %v2088_v15 = vpop.f32.mrb[20].mxu1 }
0x156b   :  { %v2089_v10 = vadd.f32 %v2088_v15, %v2026_v9  ;;  %v2515_v27 = vpop.f32.mrb[21].mxu1 }
0x156c   :  { %v2091_v24 = vpop.f32.mrb[22].mxu1 }
0x156d   :  { %v2092_v46 = vadd.f32 %v2091_v24, %v2026_v9  ;;  %v2516_v31 = vpop.f32.mrb[23].mxu1  ;;  %v2095_v33 = vadd.f32 %v3230_v32, %v2089_v10 }
0x156f   :  { %v2097_v36 = vsel %vm61_vm0, %v2095_v33, 0.0  ;;  %v2096_v37 = vadd.f32 %v3224_v45, %v2092_v46 }
0x1570   :  { %2098 = vadd.xlane.f32.xlu1 %v2097_v36 }
0x1571   :  { %v2100_v38 = vsel %vm61_vm0, %v2096_v37, 0.0 }
0x1572   :  { %2101 = vadd.xlane.f32.xlu0 %v2100_v38 }
0x15fd   :  { %v2099_v14 = vpop.xlane.xlu1 %2098 }
0x15fe   :  { %v2103_v39 = vmul.f32 0.03125, %v2099_v14 }
0x15ff   :  { %v2102_v40 = vpop.xlane.xlu0 %2101 }
0x1600   :  { %v2105_v26 = vsub.f32 %v2095_v33, %v2103_v39  ;;  %v2104_v29 = vmul.f32 0.03125, %v2102_v40 }
0x1602   :  { %v2106_v30 = vsub.f32 %v2096_v37, %v2104_v29  ;;  %v2107_v41 = vmul.f32 %v2105_v26, %v2105_v26 }
0x1604   :  { %v2109_v22 = vsel %vm61_vm0, %v2107_v41, 0.0  ;;  %v2108_v23 = vmul.f32 %v2106_v30, %v2106_v30 }
0x1605   :  { %2110 = vadd.xlane.f32.xlu1 %v2109_v22 }
0x1606   :  { %v2112_v32 = vsel %vm61_vm0, %v2108_v23, 0.0 }
0x1607   :  { %2113 = vadd.xlane.f32.xlu0 %v2112_v32 }
0x1608   :  { %2742 = shalt.err (!%p2739_p4)
}
0x1609   :  { %s2743_s28 = scalar_lea.hbm %s3324_s8, 256 }
0x160a   :  { %p2744_p5 = scmp.ne.s32.totalorder %s3324_s8, %s2743_s28  ;;  %p2747_p6 = scmp.lt.u32.totalorder %s2743_s28, %s3324_s8 }
0x160c   :  { %p2749_p7 = pnand %p2747_p6, %p2744_p5 }
0x160e   :  { %2752 = shalt.err (!%p2749_p7)
}
0x160f   :  { %s2790_s11 = smov 128   ;;  %s2791_s3 = smov 8   ;;  %v2125_v43 = vsub.s32 4, %v2912_v28  ;;  %v2131_v44 = vsub.s32 5, %v2912_v28 }
0x1610   :  { %2162 = dma.vmem_to_hbm [thread:$0]  %s2157_s24, 256, %s3324_s8, [#allocation5], %s2790_s11, %s2790_s11, %s2791_s3  }
0x1611   :  { %v2126_v47 = vrot.slane %v3250_v51, %v2125_v43  ;;  %v2132_v49 = vrot.slane %v3250_v51, %v2131_v44  ;;  %s2792_s8 = smov [#allocation2]  }
0x1612   :  { %s2144_s14 = sshll.u32 %s2792_s8, 4  ;;  %s2145_s14 = int_to_ptr.vmem [resolvable:$true] %s2144_s14 }
0x1613   :  { %s2753_s0 = scalar_lea.vmem %s2145_s14, 256  ;;  %p2758_p9 = scmp.lt.s32.totalorder %s2145_s14, %s2145_s14 }
0x1614   :  { %p2754_p8 = scmp.ne.s32.totalorder %s2145_s14, %s2753_s0  ;;  %p2759_p10 = scmp.lt.s32.totalorder %s2753_s0, %s2753_s0 }
0x1616   :  { %p2760_p11 = por %p2759_p10, %p2758_p9 }
0x1618   :  { %p2761_p12 = pnand %p2760_p11, %p2754_p8 }
0x1692   :  { %v2111_v45 = vpop.xlane.xlu1 %2110 }
0x1693   :  { %v2115_v25 = vmul.f32 0.03125, %v2111_v45 }
0x1694   :  { %v2114_v42 = vpop.xlane.xlu0 %2113 }
0x1695   :  { %v2117_v16 = vadd.f32 1e-05, %v2115_v25  ;;  %v2116_v60 = vmul.f32 0.03125, %v2114_v42 }
0x1697   :  { %2725 = vrsqrt.f32 %v2117_v16  ;;  %v2118_v61 = vadd.f32 1e-05, %v2116_v60 }
0x1699   :  { %2727 = vrsqrt.f32 %v2118_v61 }
0x16a1   :  { %v2726_v12 = vpop.eup %2725 }
0x16a2   :  { %v2121_v48 = vmul.f32 %v2726_v12, %v2105_v26 }
0x16a3   :  { %v2728_v50 = vpop.eup %2727 }
0x16a4   :  { %v2122_v52 = vmul.f32 %v2728_v50, %v2106_v30  ;;  %v2127_v18 = vmul.f32 %v2126_v47, %v2121_v48 }
0x16a6   :  { %v2128_v21 = vmul.f32 %v2126_v47, %v2122_v52  ;;  %v2133_v53 = vadd.f32 %v2132_v49, %v2127_v18 }
0x16a8   :  { %v2134_v54 = vadd.f32 %v2132_v49, %v2128_v21  ;;  %2135 = vst.msk [vmem:[#allocation2] sm:$0xff] %vm61_vm0, %v2133_v53 }
0x16aa   :  { %2136 = vst.msk [vmem:[#allocation2 + $0x8] sm:$0xff] %vm61_vm0, %v2134_v54 }
0x16ab   :  { %2764 = shalt.err (!%p2761_p12)
}
0x16ac   :  { %s2765_s17 = scalar_lea.hbm %s3323_s7, 256 }
0x16ad   :  { %p2766_p13 = scmp.ne.s32.totalorder %s3323_s7, %s2765_s17  ;;  %p2769_p0 = scmp.lt.u32.totalorder %s2765_s17, %s3323_s7 }
0x16af   :  { %p2771_p1 = pnand %p2769_p0, %p2766_p13 }
0x16b1   :  { %2774 = shalt.err (!%p2771_p1)
}
0x16b2   :  { %2150 = dma.vmem_to_hbm [thread:$0]  %s2145_s14, 256, %s3323_s7, [#allocation3], %s2790_s11, %s2790_s11, %s2791_s3  }
0x16b3   :  { %2775 = dma.done.wait [#allocation3], 256  }
0x16b4   :  { %2776 = vsyncadd [#allocation3], 4294967040 }
0x16b5   :  { %2777 = dma.done.wait [#allocation5], 256  }
0x16b6   :  { %2778 = vsyncadd [#allocation5], 4294967040 }
0x16b7   :  { %2169 = vsyncpa [#allocation3], 1 }
0x16b8   :  { %2170 = vsyncpa [#allocation5], 1 }

</bundles_post_ra>
